<compile_context>
chip_gen: v5e
topology: v5e:2x2
jax: 0.10.0
libtpu: 0.0.40
codegen_flags: <defaults>
</compile_context>

<pallas_src>
import functools
import math

import jax
import jax.numpy as jnp
from jax import lax
from jax.experimental import pallas as pl
from jax.experimental.pallas import tpu as pltpu

F32 = jnp.float32
BF16 = jnp.bfloat16

# ----------------------------- configuration --------------------------------
B_IMG = 2            # image batch (also the LSTM sequence length in eval)
IMG_RES = 32
TXT_LEN = 8          # cfg.word_len / context length
VOCAB = 64
DT = 64              # transformer_width (small); heads = DT // 64 = 1
TXT_LAYERS = 2
EMBED_DIM = 64       # CLIP embed_dim (text "state" / word_dim, small)
FEAT_H = FEAT_W = 8
HW = FEAT_H * FEAT_W
C4 = 64              # synthetic top pyramid channel count from the backbone
VIS_DIM = 512        # cfg.vis_dim — must be 512 (LSTM input is hard-coded 512)
LSTM_HIDDEN = 512    # hard-coded in the module
NUM_ACTIONS = 12
NUM_OBJECTS = 94
HEAD_PAD = 128       # act(12)|obj(94)|eos(1)|zero-pad(21) -> lane-dense store
DEC_HEADS = 8        # cfg.num_head
NEG_INF = -1e9       # large finite negative (safer than -inf through softmax)


# ------------------------ fused CLIP text encoder -----------------------------
def _text_encoder_kernel(x_ref, mask_ref, eot_ref,
                         wq_ref, bq_ref, wk_ref, bk_ref, wv_ref, bv_ref,
                         wo_ref, bo_ref, g1_ref, be1_ref, g2_ref, be2_ref,
                         wfc_ref, bfc_ref, wpr_ref, bpr_ref,
                         gf_ref, bf_ref, tp_ref,
                         wf_out_ref, state_out_ref, *, num_layers, num_heads):
    B, L, D = x_ref.shape
    x = x_ref[...].astype(F32)                              # (B, L, D)
    mask = mask_ref[...]                                    # (L, L) causal

    def ln(v, g, b):
        mu = jnp.mean(v, axis=-1, keepdims=True)
        var = jnp.mean((v - mu) ** 2, axis=-1, keepdims=True)
        return (v - mu) * lax.rsqrt(var + 1e-5) * g + b

    # transformer_heads = transformer_width // 64 == 1 at this width.
    scale = 1.0 / math.sqrt(D // num_heads)

    for layer in range(num_layers):                         # static unrolled loop
        h2 = ln(x.reshape(B * L, D), g1_ref[layer], be1_ref[layer])
        q = (jnp.dot(h2, wq_ref[layer], preferred_element_type=F32)
             + bq_ref[layer]).reshape(B, L, D)
        k = (jnp.dot(h2, wk_ref[layer], preferred_element_type=F32)
             + bk_ref[layer]).reshape(B, L, D)
        v = (jnp.dot(h2, wv_ref[layer], preferred_element_type=F32)
             + bv_ref[layer]).reshape(B, L, D)
        s = jnp.einsum('bqd,bkd->bqk', q, k,
                       preferred_element_type=F32) * scale + mask
        s = s - jnp.max(s, axis=-1, keepdims=True)
        e = jnp.exp(s)
        p = e * pl.reciprocal(jnp.sum(e, axis=-1, keepdims=True), approx=True)
        attn = jnp.einsum('bqk,bkd->bqd', p, v, preferred_element_type=F32)
        attn2 = (jnp.dot(attn.reshape(B * L, D), wo_ref[layer],
                         preferred_element_type=F32) + bo_ref[layer])
        x = x + attn2.reshape(B, L, D)

        h2 = ln(x.reshape(B * L, D), g2_ref[layer], be2_ref[layer])
        h2 = jnp.dot(h2, wfc_ref[layer], preferred_element_type=F32) + bfc_ref[layer]
        h2 = h2 * jax.nn.sigmoid(1.702 * h2)                # QuickGELU (CLIP)
        h2 = jnp.dot(h2, wpr_ref[layer], preferred_element_type=F32) + bpr_ref[layer]
        x = x + h2.reshape(B, L, D)

    xf = ln(x.reshape(B * L, D), gf_ref[...], bf_ref[...]).reshape(B, L, D)
    wf_out_ref[...] = xf.astype(wf_out_ref.dtype)
    # EOT gather via one-hot weighting (eot = argmax(token ids) per batch).
    eot = eot_ref[...]                                      # (B, L) one-hot
    state_tok = jnp.sum(xf * eot[:, :, None], axis=1)       # (B, D)
    state_out_ref[...] = jnp.dot(state_tok, tp_ref[...],
                                 preferred_element_type=F32).astype(state_out_ref.dtype)


def encode_text(word_ids, p):
    """ModifiedCLIP.encode_text: (per-token features, projected EOT state)."""
    B, L = word_ids.shape
    x = p['token_embedding'][word_ids]                      # XLA gather (glue)
    x = x + p['positional_embedding'][None, :L]
    eot_onehot = jax.nn.one_hot(jnp.argmax(word_ids, axis=-1), L, dtype=F32)
    causal = jnp.triu(jnp.full((L, L), NEG_INF, F32), k=1)  # build_attention_mask_
    heads = max(DT // 64, 1)
    assert heads == 1, "fused text kernel written for the 1-head (width 64) case"
    word_feats, state = pl.pallas_call(
        functools.partial(_text_encoder_kernel,
                          num_layers=TXT_LAYERS, num_heads=heads),
        out_shape=(jax.ShapeDtypeStruct((B, L, DT), F32),
                   jax.ShapeDtypeStruct((B, EMBED_DIM), F32)),
    )(x, causal, eot_onehot,
      p['t_wq'], p['t_bq'], p['t_wk'], p['t_bk'], p['t_wv'], p['t_bv'],
      p['t_wo'], p['t_bo'], p['t_g1'], p['t_be1'], p['t_g2'], p['t_be2'],
      p['t_wfc'], p['t_bfc'], p['t_wpr'], p['t_bpr'],
      p['ln_final_g'], p['ln_final_b'], p['text_projection'])
    return word_feats, state


# ---------------- fused vision stem + neck + decoder + pool + proj ------------
def _vision_fused_kernel(xp_ref, state_ref, wf_ref, bias_ref,
                         sw_ref, sb_ref, nwv_ref, nws_ref, nb_ref,
                         dwq_ref, dwk_ref, dwv_ref, dwo_ref, pwv_ref,
                         vl_ref, pred_ref, *, num_heads):
    # TODO(synk): CLIP ResNet pyramid backbone, FPN neck, CRIS TransformerDecoder
    # and Projector bodies are not provided; this fused kernel implements Pallas
    # stand-ins keeping fq resident in VMEM across all stages.
    xp = xp_ref[0].astype(F32)                              # (HW, 3)
    x4 = jnp.dot(xp, sw_ref[...], preferred_element_type=F32) + sb_ref[...]
    st = state_ref[0].astype(F32)                           # (1, EMBED)
    # --- FPN neck stand-in: channel projection + text conditioning ---
    t = jnp.dot(st, nws_ref[...], preferred_element_type=F32)               # (1, VIS)
    fq = jax.nn.relu(jnp.dot(x4, nwv_ref[...], preferred_element_type=F32)
                     + t + nb_ref[...])                                     # (HW, VIS)
    # --- decoder stand-in: multi-head cross attention over word features ---
    wf = wf_ref[0].astype(F32)                              # (L, DT)
    bias = bias_ref[0]                                      # (1, L) pad bias
    q = jnp.dot(fq, dwq_ref[...], preferred_element_type=F32)               # (HW, VIS)
    k = jnp.dot(wf, dwk_ref[...], preferred_element_type=F32)               # (L, VIS)
    v = jnp.dot(wf, dwv_ref[...], preferred_element_type=F32)               # (L, VIS)
    kT = k.T                                                # one transpose, all heads
    hd = q.shape[-1] // num_heads
    scale = 1.0 / math.sqrt(hd)
    acc = jnp.zeros((q.shape[0], dwo_ref.shape[1]), F32)
    for hh in range(num_heads):
        sl = slice(hh * hd, (hh + 1) * hd)
        s = jnp.dot(q[:, sl] * scale, kT[sl, :], preferred_element_type=F32) + bias
        s = s - jnp.max(s, axis=-1, keepdims=True)
        e = jnp.exp(s)
        p_attn = e * pl.reciprocal(jnp.sum(e, axis=-1, keepdims=True), approx=True)
        out_h = jnp.dot(p_attn, v[:, sl], preferred_element_type=F32)       # (HW, hd)
        # fold head output straight into the output projection (no concat)
        acc = acc + jnp.dot(out_h, dwo_ref[sl, :], preferred_element_type=F32)
    fq = jax.nn.relu(fq + acc)                              # (HW, VIS)
    # --- spatial mean pooling (vl_features), lane-dense (1,512) store ---
    vl_ref[0] = jnp.mean(fq, axis=0, keepdims=True).astype(vl_ref.dtype)
    # --- projector fq-branch stand-in, emitted lane-dense as (1, HW) ---
    pred_ref[0] = jnp.dot(pwv_ref[...], fq.T,
                          preferred_element_type=F32).astype(pred_ref.dtype)


def vision_decoder_fused(x_patch, state, word_feats, pad_bias, p):
    B = x_patch.shape[0]
    L = word_feats.shape[1]
    state3 = state[:, None, :]                              # (B,1,EMBED)
    bias3 = pad_bias[:, None, :]                            # (B,1,L)
    vl3, pred3 = pl.pallas_call(
        functools.partial(_vision_fused_kernel, num_heads=DEC_HEADS),
        grid=(B,),
        in_specs=[
            pl.BlockSpec((1, HW, 3), lambda b: (b, 0, 0)),
            pl.BlockSpec((1, 1, EMBED_DIM), lambda b: (b, 0, 0)),
            pl.BlockSpec((1, L, DT), lambda b: (b, 0, 0)),
            pl.BlockSpec((1, 1, L), lambda b: (b, 0, 0)),
            pl.BlockSpec((3, C4), lambda b: (0, 0)),
            pl.BlockSpec((1, C4), lambda b: (0, 0)),
            pl.BlockSpec((C4, VIS_DIM), lambda b: (0, 0)),
            pl.BlockSpec((EMBED_DIM, VIS_DIM), lambda b: (0, 0)),
            pl.BlockSpec((1, VIS_DIM), lambda b: (0, 0)),
            pl.BlockSpec((VIS_DIM, VIS_DIM), lambda b: (0, 0)),
            pl.BlockSpec((DT, VIS_DIM), lambda b: (0, 0)),
            pl.BlockSpec((DT, VIS_DIM), lambda b: (0, 0)),
            pl.BlockSpec((VIS_DIM, VIS_DIM), lambda b: (0, 0)),
            pl.BlockSpec((1, VIS_DIM), lambda b: (0, 0)),
        ],
        out_specs=(pl.BlockSpec((1, 1, VIS_DIM), lambda b: (b, 0, 0)),
                   pl.BlockSpec((1, 1, HW), lambda b: (b, 0, 0))),
        out_shape=(jax.ShapeDtypeStruct((B, 1, VIS_DIM), F32),
                   jax.ShapeDtypeStruct((B, 1, HW), F32)),
        compiler_params=pltpu.CompilerParams(
            dimension_semantics=("parallel",),          # 2 batch items -> 2 TCs on v7x
            vmem_limit_bytes=32 * 1024 * 1024),
    )(x_patch, state3, word_feats, bias3,
      p['stem_w'], p['stem_b'], p['neck_wv'], p['neck_ws'], p['neck_b'],
      p['dec_wq'], p['dec_wk'], p['dec_wv'], p['dec_wo'], p['proj_wv'])
    return vl3[:, 0, :], pred3[:, 0, :]


# -------------------- fused 2-layer LSTM + classifier heads -------------------
def _lstm_heads_kernel(x_ref, h0_ref, c0_ref,
                       wih0_ref, whh0_ref, b0_ref,
                       wih1_ref, whh1_ref, b1_ref,
                       hw_ref, hb_ref, state_ref, pts_ref, pto_ref, pb_ref,
                       out_ref, ht_ref, ct_ref, logits_ref, projt_ref,
                       xg_scr, hseq_scr, *, hidden, seq_len):
    H = hidden

    def gates(g, c):
        # PyTorch nn.LSTM gate order i, f, g, o; bias here == b_ih + b_hh when
        # loading real checkpoints.
        i = jax.nn.sigmoid(g[:, 0:H])
        f = jax.nn.sigmoid(g[:, H:2 * H])
        gg = jnp.tanh(g[:, 2 * H:3 * H])
        o = jax.nn.sigmoid(g[:, 3 * H:4 * H])
        c_new = f * c + i * gg
        return o * jnp.tanh(c_new), c_new

    # --- layer 0: input projection hoisted out of the recurrence (one matmul) --
    xg_scr[...] = (jnp.dot(x_ref[...].astype(BF16), wih0_ref[...],
                           preferred_element_type=F32) + b0_ref[...])

    def body0(t, carry):
        h, c = carry
        g = xg_scr[pl.ds(t, 1), :] + jnp.dot(h.astype(BF16), whh0_ref[...],
                                             preferred_element_type=F32)
        h, c = gates(g, c)
        hseq_scr[pl.ds(t, 1), :] = h
        return (h, c)

    h_l0, c_l0 = lax.fori_loop(
        0, seq_len, body0,
        (h0_ref[0:1, :].astype(F32), c0_ref[0:1, :].astype(F32)),
        unroll=True)

    # --- layer 1: input projection hoisted over the full layer-0 sequence -----
    # (inter-layer dropout p=0.1 is inactive in eval mode)
    xg_scr[...] = (jnp.dot(hseq_scr[...].astype(BF16), wih1_ref[...],
                           preferred_element_type=F32) + b1_ref[...])

    def body1(t, carry):
        h, c = carry
        g = xg_scr[pl.ds(t, 1), :] + jnp.dot(h.astype(BF16), whh1_ref[...],
                                             preferred_element_type=F32)
        h, c = gates(g, c)
        out_ref[pl.ds(t, 1), :] = h.astype(out_ref.dtype)
        return (h, c)

    h_l1, c_l1 = lax.fori_loop(
        0, seq_len, body1,
        (h0_ref[1:2, :].astype(F32), c0_ref[1:2, :].astype(F32)),
        unroll=True)

    ht_ref[...] = jnp.concatenate([h_l0, h_l1], axis=0).astype(ht_ref.dtype)
    ct_ref[...] = jnp.concatenate([c_l0, c_l1], axis=0).astype(ct_ref.dtype)

    # --- fused classifier heads: act | obj | eos packed into 128 lanes --------
    out_all = out_ref[...].astype(F32)
    logits_ref[...] = (jnp.dot(out_all, hw_ref[...], preferred_element_type=F32)
                       + hb_ref[...]).astype(logits_ref.dtype)
    # --- projector text branch: [state, out] @ proj_wt + b (split weight) -----
    projt_ref[...] = (jnp.dot(out_all, pto_ref[...], preferred_element_type=F32)
                      + jnp.dot(state_ref[...].astype(F32), pts_ref[...],
                                preferred_element_type=F32)
                      + pb_ref[...]).astype(projt_ref.dtype)


def lstm_and_heads(vl, h0, c0, state, p):
    T = vl.shape[0]
    H = LSTM_HIDDEN
    lp = p['lstm']
    out_shapes = (jax.ShapeDtypeStruct((T, H), F32),
                  jax.ShapeDtypeStruct((2, H), F32),
                  jax.ShapeDtypeStruct((2, H), F32),
                  jax.ShapeDtypeStruct((T, HEAD_PAD), F32),
                  jax.ShapeDtypeStruct((T, 1), F32))
    return pl.pallas_call(
        functools.partial(_lstm_heads_kernel, hidden=H, seq_len=T),
        out_shape=out_shapes,
        scratch_shapes=[pltpu.VMEM((T, 4 * H), F32),       # hoisted gate pre-acts
                        pltpu.VMEM((T, H), F32)],          # layer-0 hidden sequence
        compiler_params=pltpu.CompilerParams(
            vmem_limit_bytes=32 * 1024 * 1024),            # safe on v7x (64 MiB/TC)
    )(vl, h0, c0,
      lp['wih0'], lp['whh0'], lp['b0'],
      lp['wih1'], lp['whh1'], lp['b1'],
      p['heads_w'], p['heads_b'], state,
      p['proj_wt_s'], p['proj_wt_o'], p['proj_b'])


# ------------------------------ parameter init --------------------------------
def init_params(key):
    keys = jax.random.split(key, 64)
    it = iter(keys)

    def nrm(shape, std=0.02):
        return jax.random.normal(next(it), shape, F32) * std

    p = {}
    # --- CLIP text encoder (per-layer weights stacked on a leading axis) ---
    p['token_embedding'] = nrm((VOCAB, DT))
    p['positional_embedding'] = nrm((TXT_LEN, DT), 0.01)
    blocks = []
    for _ in range(TXT_LAYERS):
        blocks.append(dict(
            wq=nrm((DT, DT)), bq=jnp.zeros((1, DT), F32),
            wk=nrm((DT, DT)), bk=jnp.zeros((1, DT), F32),
            wv=nrm((DT, DT)), bv=jnp.zeros((1, DT), F32),
            wo=nrm((DT, DT)), bo=jnp.zeros((1, DT), F32),
            g1=jnp.ones((1, DT), F32), be1=jnp.zeros((1, DT), F32),
            g2=jnp.ones((1, DT), F32), be2=jnp.zeros((1, DT), F32),
            wfc=nrm((DT, 4 * DT)), bfc=jnp.zeros((1, 4 * DT), F32),
            wpr=nrm((4 * DT, DT)), bpr=jnp.zeros((1, DT), F32),
        ))
    for name in ['wq', 'bq', 'wk', 'bk', 'wv', 'bv', 'wo', 'bo',
                 'g1', 'be1', 'g2', 'be2', 'wfc', 'bfc', 'wpr', 'bpr']:
        p['t_' + name] = jnp.stack([blk[name] for blk in blocks], axis=0)
    p['ln_final_g'] = jnp.ones((1, DT), F32)
    p['ln_final_b'] = jnp.zeros((1, DT), F32)
    p['text_projection'] = nrm((DT, EMBED_DIM))
    # --- image backbone stand-in ---
    p['stem_w'] = nrm((3, C4))
    p['stem_b'] = jnp.zeros((1, C4), F32)
    # --- FPN neck stand-in ---
    p['neck_wv'] = nrm((C4, VIS_DIM))
    p['neck_ws'] = nrm((EMBED_DIM, VIS_DIM))
    p['neck_b'] = jnp.zeros((1, VIS_DIM), F32)
    # --- decoder cross-attention stand-in ---
    p['dec_wq'] = nrm((VIS_DIM, VIS_DIM))
    p['dec_wk'] = nrm((DT, VIS_DIM))
    p['dec_wv'] = nrm((DT, VIS_DIM))
    p['dec_wo'] = nrm((VIS_DIM, VIS_DIM))
    # --- LSTM (input 512, hidden 512, 2 layers). Weights stored bf16: halves
    #     HBM->VMEM DMA of the largest tensors in the model; f32 accumulation
    #     inside the kernel.  Bias = b_ih + b_hh when loading real checkpoints.
    H = LSTM_HIDDEN
    p['lstm'] = dict(
        wih0=nrm((VIS_DIM, 4 * H)).astype(BF16), whh0=nrm((H, 4 * H)).astype(BF16),
        b0=jnp.zeros((1, 4 * H), F32),
        wih1=nrm((H, 4 * H)).astype(BF16), whh1=nrm((H, 4 * H)).astype(BF16),
        b1=jnp.zeros((1, 4 * H), F32),
    )
    # --- classifiers, fused into one lane-dense (512, 128) head matrix ---
    act_w = nrm((H, NUM_ACTIONS))
    obj_w = nrm((H, NUM_OBJECTS))
    eos_w = nrm((H, 1))
    p['heads_w'] = jnp.concatenate(
        [act_w, obj_w, eos_w,
         jnp.zeros((H, HEAD_PAD - (NUM_ACTIONS + NUM_OBJECTS + 1)), F32)], axis=1)
    p['heads_b'] = jnp.zeros((1, HEAD_PAD), F32)
    # --- projector stand-in (fq-branch weight stored as a (1, VIS) row) ---
    p['proj_wv'] = nrm((1, VIS_DIM))
    p['proj_wt_s'] = nrm((EMBED_DIM, 1))
    p['proj_wt_o'] = nrm((H, 1))
    p['proj_b'] = jnp.zeros((1, 1), F32)
    return p


# ------------------------------- model pieces ---------------------------------
def pool_image_stub(img):
    # TODO(synk): ModifiedResnetWithPyramidOutput (CLIP ResNet stem/layers +
    # ModifiedAttentionPool2d) is not reproduced; average-pool patches to a
    # (B, H*W, 3) map; the stem projection is fused into the vision kernel.
    B = img.shape[0]
    ph, pw = img.shape[2] // FEAT_H, img.shape[3] // FEAT_W
    x = img.reshape(B, 3, FEAT_H, ph, FEAT_W, pw).mean(axis=(3, 5))   # (B,3,h,w)
    return jnp.transpose(x, (0, 2, 3, 1)).reshape(B, HW, 3)


def forward(img, word_ids, params, ht_1=None, ct_1=None):
    """Eval-mode forward of ActionMaskPredictionModel."""
    B = word_ids.shape[0]
    # pad_mask = zeros_like(word).masked_fill_(word == 0, 1).bool()
    pad_mask = (word_ids == 0)
    pad_bias = jnp.where(pad_mask, NEG_INF, 0.0).astype(F32)          # (B, L)

    x_patch = pool_image_stub(img)                                    # backbone stub
    word_feats, state = encode_text(word_ids, params)                 # fused call 1

    # fused call 2: neck -> decoder -> mean-pool -> projector fq-branch
    vl_features, pred_fq = vision_decoder_fused(
        x_patch, state, word_feats, pad_bias, params)

    if ht_1 is None or ct_1 is None:
        h0 = jnp.zeros((2, LSTM_HIDDEN), F32)
        c0 = jnp.zeros((2, LSTM_HIDDEN), F32)
    else:
        h0 = ht_1.reshape(2, LSTM_HIDDEN)
        c0 = ct_1.reshape(2, LSTM_HIDDEN)

    # eval: the whole batch is one sequence (unsqueeze(0) -> batch=1, T=B)
    out, ht, ct, logits, proj_t = lstm_and_heads(                      # fused call 3
        vl_features, h0, c0, state, params)

    action_logits = logits[:, :NUM_ACTIONS][None]                      # (1,B,12)
    object_logits = logits[:, NUM_ACTIONS:NUM_ACTIONS + NUM_OBJECTS][None]
    eos_logits = logits[:, NUM_ACTIONS + NUM_OBJECTS:
                        NUM_ACTIONS + NUM_OBJECTS + 1][None]           # (1,B,1)

    # pred = proj(fq, [state, out]): fq-branch from the vision kernel, text
    # branch from the LSTM epilogue; the tiny broadcast add stays in XLA.
    pred = (pred_fq + proj_t).reshape(B, 1, FEAT_H, FEAT_W)

    ht = ht[:, None, :]                                                # (2,1,hidden)
    ct = ct[:, None, :]
    return pred, [action_logits], [object_logits], [eos_logits], ht, ct


# ------------------------------------ main ------------------------------------
if __name__ == "__main__":
    key = jax.random.PRNGKey(0)
    pkey, ikey, wkey = jax.random.split(key, 3)
    params = init_params(pkey)

    img = jax.random.normal(ikey, (B_IMG, 3, IMG_RES, IMG_RES), F32)
    # token ids: nonzero words, an explicit EOT token (max id) then zero padding
    word = jax.random.randint(wkey, (B_IMG, TXT_LEN), 1, VOCAB - 1)
    word = word.at[0, 4].set(VOCAB - 1).at[0, 5:].set(0)
    word = word.at[1, 6].set(VOCAB - 1).at[1, 7:].set(0)

    pred, act_l, obj_l, eos_l, ht, ct = forward(img, word, params)
    jax.block_until_ready((pred, act_l[0], obj_l[0], eos_l[0], ht, ct))

    assert pred.shape == (B_IMG, 1, FEAT_H, FEAT_W)
    assert act_l[0].shape == (1, B_IMG, NUM_ACTIONS)
    assert obj_l[0].shape == (1, B_IMG, NUM_OBJECTS)
    assert eos_l[0].shape == (1, B_IMG, 1)
    assert ht.shape == (2, 1, LSTM_HIDDEN) and ct.shape == (2, 1, LSTM_HIDDEN)
    print("KERNEL_OK")
</pallas_src>

<mosaic_0001>
module attributes {stable_mosaic.version = 11 : i64} {
  func.func @_text_encoder_kernel(%arg0: memref<2x8x64xf32, #tpu.memory_space<vmem>>, %arg1: memref<8x8xf32, #tpu.memory_space<vmem>>, %arg2: memref<2x8xf32, #tpu.memory_space<vmem>>, %arg3: memref<2x64x64xf32, #tpu.memory_space<vmem>>, %arg4: memref<2x1x64xf32, #tpu.memory_space<vmem>>, %arg5: memref<2x64x64xf32, #tpu.memory_space<vmem>>, %arg6: memref<2x1x64xf32, #tpu.memory_space<vmem>>, %arg7: memref<2x64x64xf32, #tpu.memory_space<vmem>>, %arg8: memref<2x1x64xf32, #tpu.memory_space<vmem>>, %arg9: memref<2x64x64xf32, #tpu.memory_space<vmem>>, %arg10: memref<2x1x64xf32, #tpu.memory_space<vmem>>, %arg11: memref<2x1x64xf32, #tpu.memory_space<vmem>>, %arg12: memref<2x1x64xf32, #tpu.memory_space<vmem>>, %arg13: memref<2x1x64xf32, #tpu.memory_space<vmem>>, %arg14: memref<2x1x64xf32, #tpu.memory_space<vmem>>, %arg15: memref<2x64x256xf32, #tpu.memory_space<vmem>>, %arg16: memref<2x1x256xf32, #tpu.memory_space<vmem>>, %arg17: memref<2x256x64xf32, #tpu.memory_space<vmem>>, %arg18: memref<2x1x64xf32, #tpu.memory_space<vmem>>, %arg19: memref<1x64xf32, #tpu.memory_space<vmem>>, %arg20: memref<1x64xf32, #tpu.memory_space<vmem>>, %arg21: memref<64x64xf32, #tpu.memory_space<vmem>>, %arg22: memref<2x8x64xf32, #tpu.memory_space<vmem>>, %arg23: memref<2x64xf32, #tpu.memory_space<vmem>>) attributes {dimension_semantics = [], scalar_prefetch = 0 : i64, scratch_operands = 0 : i64, tpu.core_type = #tpu.core_type<tc>} {
    %c0 = arith.constant 0 : index
    %c0_0 = arith.constant 0 : index
    %c0_1 = arith.constant 0 : index
    %0 = vector.load %arg0[%c0, %c0_0, %c0_1] : memref<2x8x64xf32, #tpu.memory_space<vmem>>, vector<2x8x64xf32>
    %c0_2 = arith.constant 0 : index
    %c0_3 = arith.constant 0 : index
    %1 = vector.load %arg1[%c0_2, %c0_3] : memref<8x8xf32, #tpu.memory_space<vmem>>, vector<8x8xf32>
    %2 = vector.shape_cast %0 : vector<2x8x64xf32> to vector<16x64xf32>
    %c0_4 = arith.constant 0 : index
    %c0_5 = arith.constant 0 : index
    %c0_6 = arith.constant 0 : index
    %3 = vector.load %arg11[%c0_4, %c0_5, %c0_6] : memref<2x1x64xf32, #tpu.memory_space<vmem>>, vector<1x1x64xf32>
    %4 = vector.shape_cast %3 : vector<1x1x64xf32> to vector<1x64xf32>
    %c0_7 = arith.constant 0 : index
    %c0_8 = arith.constant 0 : index
    %c0_9 = arith.constant 0 : index
    %5 = vector.load %arg12[%c0_7, %c0_8, %c0_9] : memref<2x1x64xf32, #tpu.memory_space<vmem>>, vector<1x1x64xf32>
    %6 = vector.shape_cast %5 : vector<1x1x64xf32> to vector<1x64xf32>
    %cst = arith.constant dense<0.000000e+00> : vector<16xf32>
    %7 = vector.multi_reduction <add>, %2, %cst [1] : vector<16x64xf32> to vector<16xf32>
    %8 = vector.shape_cast %7 : vector<16xf32> to vector<16x1xf32>
    %cst_10 = arith.constant 6.400000e+01 : f32
    %9 = vector.broadcast %cst_10 : f32 to vector<16x1xf32>
    %10 = arith.divf %8, %9 : vector<16x1xf32>
    %11 = vector.broadcast %10 : vector<16x1xf32> to vector<16x64xf32>
    %12 = arith.subf %2, %11 : vector<16x64xf32>
    %13 = arith.mulf %12, %12 : vector<16x64xf32>
    %cst_11 = arith.constant dense<0.000000e+00> : vector<16xf32>
    %14 = vector.multi_reduction <add>, %13, %cst_11 [1] : vector<16x64xf32> to vector<16xf32>
    %15 = vector.shape_cast %14 : vector<16xf32> to vector<16x1xf32>
    %cst_12 = arith.constant 6.400000e+01 : f32
    %16 = vector.broadcast %cst_12 : f32 to vector<16x1xf32>
    %17 = arith.divf %15, %16 : vector<16x1xf32>
    %18 = vector.broadcast %10 : vector<16x1xf32> to vector<16x64xf32>
    %19 = arith.subf %2, %18 : vector<16x64xf32>
    %cst_13 = arith.constant 9.99999974E-6 : f32
    %20 = vector.broadcast %cst_13 : f32 to vector<16x1xf32>
    %21 = arith.addf %17, %20 : vector<16x1xf32>
    %22 = math.rsqrt %21 : vector<16x1xf32>
    %23 = vector.broadcast %22 : vector<16x1xf32> to vector<16x64xf32>
    %24 = arith.mulf %19, %23 : vector<16x64xf32>
    %25 = vector.broadcast %4 : vector<1x64xf32> to vector<16x64xf32>
    %26 = arith.mulf %24, %25 : vector<16x64xf32>
    %27 = vector.broadcast %6 : vector<1x64xf32> to vector<16x64xf32>
    %28 = arith.addf %26, %27 : vector<16x64xf32>
    %c0_14 = arith.constant 0 : index
    %c0_15 = arith.constant 0 : index
    %c0_16 = arith.constant 0 : index
    %29 = vector.load %arg3[%c0_14, %c0_15, %c0_16] : memref<2x64x64xf32, #tpu.memory_space<vmem>>, vector<1x64x64xf32>
    %30 = vector.shape_cast %29 : vector<1x64x64xf32> to vector<64x64xf32>
    %cst_17 = arith.constant dense<0.000000e+00> : vector<16x64xf32>
    %31 = tpu.matmul %28, %30, %cst_17 {dimension_numbers = #tpu.dot_dimension_numbers<[1], [0], [0], [1], [0, 0, 1, 1], [], []>} : vector<16x64xf32>, vector<64x64xf32>, vector<16x64xf32> -> vector<16x64xf32>
    %c0_18 = arith.constant 0 : index
    %c0_19 = arith.constant 0 : index
    %c0_20 = arith.constant 0 : index
    %32 = vector.load %arg4[%c0_18, %c0_19, %c0_20] : memref<2x1x64xf32, #tpu.memory_space<vmem>>, vector<1x1x64xf32>
    %33 = vector.shape_cast %32 : vector<1x1x64xf32> to vector<1x64xf32>
    %34 = vector.broadcast %33 : vector<1x64xf32> to vector<16x64xf32>
    %35 = arith.addf %31, %34 : vector<16x64xf32>
    %36 = vector.shape_cast %35 : vector<16x64xf32> to vector<2x8x64xf32>
    %c0_21 = arith.constant 0 : index
    %c0_22 = arith.constant 0 : index
    %c0_23 = arith.constant 0 : index
    %37 = vector.load %arg5[%c0_21, %c0_22, %c0_23] : memref<2x64x64xf32, #tpu.memory_space<vmem>>, vector<1x64x64xf32>
    %38 = vector.shape_cast %37 : vector<1x64x64xf32> to vector<64x64xf32>
    %cst_24 = arith.constant dense<0.000000e+00> : vector<16x64xf32>
    %39 = tpu.matmul %28, %38, %cst_24 {dimension_numbers = #tpu.dot_dimension_numbers<[1], [0], [0], [1], [0, 0, 1, 1], [], []>} : vector<16x64xf32>, vector<64x64xf32>, vector<16x64xf32> -> vector<16x64xf32>
    %c0_25 = arith.constant 0 : index
    %c0_26 = arith.constant 0 : index
    %c0_27 = arith.constant 0 : index
    %40 = vector.load %arg6[%c0_25, %c0_26, %c0_27] : memref<2x1x64xf32, #tpu.memory_space<vmem>>, vector<1x1x64xf32>
    %41 = vector.shape_cast %40 : vector<1x1x64xf32> to vector<1x64xf32>
    %42 = vector.broadcast %41 : vector<1x64xf32> to vector<16x64xf32>
    %43 = arith.addf %39, %42 : vector<16x64xf32>
    %44 = vector.shape_cast %43 : vector<16x64xf32> to vector<2x8x64xf32>
    %c0_28 = arith.constant 0 : index
    %c0_29 = arith.constant 0 : index
    %c0_30 = arith.constant 0 : index
    %45 = vector.load %arg7[%c0_28, %c0_29, %c0_30] : memref<2x64x64xf32, #tpu.memory_space<vmem>>, vector<1x64x64xf32>
    %46 = vector.shape_cast %45 : vector<1x64x64xf32> to vector<64x64xf32>
    %cst_31 = arith.constant dense<0.000000e+00> : vector<16x64xf32>
    %47 = tpu.matmul %28, %46, %cst_31 {dimension_numbers = #tpu.dot_dimension_numbers<[1], [0], [0], [1], [0, 0, 1, 1], [], []>} : vector<16x64xf32>, vector<64x64xf32>, vector<16x64xf32> -> vector<16x64xf32>
    %c0_32 = arith.constant 0 : index
    %c0_33 = arith.constant 0 : index
    %c0_34 = arith.constant 0 : index
    %48 = vector.load %arg8[%c0_32, %c0_33, %c0_34] : memref<2x1x64xf32, #tpu.memory_space<vmem>>, vector<1x1x64xf32>
    %49 = vector.shape_cast %48 : vector<1x1x64xf32> to vector<1x64xf32>
    %50 = vector.broadcast %49 : vector<1x64xf32> to vector<16x64xf32>
    %51 = arith.addf %47, %50 : vector<16x64xf32>
    %52 = vector.shape_cast %51 : vector<16x64xf32> to vector<2x8x64xf32>
    "tpu.trace_start"() <{level = 10 : i32, message = "bqd,bkd->bqk"}> : () -> ()
    %cst_35 = arith.constant dense<0.000000e+00> : vector<2x8x8xf32>
    %53 = tpu.matmul %36, %44, %cst_35 {dimension_numbers = #tpu.dot_dimension_numbers<[2], [2], [1], [1], [0, 0, 0, 1, 1, 1], [0], [0]>} : vector<2x8x64xf32>, vector<2x8x64xf32>, vector<2x8x8xf32> -> vector<2x8x8xf32>
    "tpu.trace_stop"() : () -> ()
    %cst_36 = arith.constant 1.250000e-01 : f32
    %54 = vector.broadcast %cst_36 : f32 to vector<2x8x8xf32>
    %55 = arith.mulf %53, %54 : vector<2x8x8xf32>
    %56 = vector.shape_cast %1 : vector<8x8xf32> to vector<1x8x8xf32>
    %57 = vector.broadcast %56 : vector<1x8x8xf32> to vector<2x8x8xf32>
    %58 = arith.addf %55, %57 : vector<2x8x8xf32>
    %cst_37 = arith.constant dense<0xFF800000> : vector<2x8xf32>
    %59 = vector.multi_reduction <maximumf>, %58, %cst_37 [2] : vector<2x8x8xf32> to vector<2x8xf32>
    %60 = vector.shape_cast %59 : vector<2x8xf32> to vector<2x8x1xf32>
    %61 = vector.broadcast %60 : vector<2x8x1xf32> to vector<2x8x8xf32>
    %62 = arith.subf %58, %61 : vector<2x8x8xf32>
    %63 = math.exp %62 : vector<2x8x8xf32>
    %cst_38 = arith.constant dense<0.000000e+00> : vector<2x8xf32>
    %64 = vector.multi_reduction <add>, %63, %cst_38 [2] : vector<2x8x8xf32> to vector<2x8xf32>
    %65 = vector.shape_cast %64 : vector<2x8xf32> to vector<2x8x1xf32>
    %66 = tpu.reciprocal %65 {approx = true} : vector<2x8x1xf32> -> vector<2x8x1xf32>
    %67 = vector.broadcast %66 : vector<2x8x1xf32> to vector<2x8x8xf32>
    %68 = arith.mulf %63, %67 : vector<2x8x8xf32>
    "tpu.trace_start"() <{level = 10 : i32, message = "bqk,bkd->bqd"}> : () -> ()
    %cst_39 = arith.constant dense<0.000000e+00> : vector<2x8x64xf32>
    %69 = tpu.matmul %68, %52, %cst_39 {dimension_numbers = #tpu.dot_dimension_numbers<[2], [1], [1], [2], [0, 0, 0, 1, 1, 2], [0], [0]>} : vector<2x8x8xf32>, vector<2x8x64xf32>, vector<2x8x64xf32> -> vector<2x8x64xf32>
    "tpu.trace_stop"() : () -> ()
    %70 = vector.shape_cast %69 : vector<2x8x64xf32> to vector<16x64xf32>
    %c0_40 = arith.constant 0 : index
    %c0_41 = arith.constant 0 : index
    %c0_42 = arith.constant 0 : index
    %71 = vector.load %arg9[%c0_40, %c0_41, %c0_42] : memref<2x64x64xf32, #tpu.memory_space<vmem>>, vector<1x64x64xf32>
    %72 = vector.shape_cast %71 : vector<1x64x64xf32> to vector<64x64xf32>
    %cst_43 = arith.constant dense<0.000000e+00> : vector<16x64xf32>
    %73 = tpu.matmul %70, %72, %cst_43 {dimension_numbers = #tpu.dot_dimension_numbers<[1], [0], [0], [1], [0, 0, 1, 1], [], []>} : vector<16x64xf32>, vector<64x64xf32>, vector<16x64xf32> -> vector<16x64xf32>
    %c0_44 = arith.constant 0 : index
    %c0_45 = arith.constant 0 : index
    %c0_46 = arith.constant 0 : index
    %74 = vector.load %arg10[%c0_44, %c0_45, %c0_46] : memref<2x1x64xf32, #tpu.memory_space<vmem>>, vector<1x1x64xf32>
    %75 = vector.shape_cast %74 : vector<1x1x64xf32> to vector<1x64xf32>
    %76 = vector.broadcast %75 : vector<1x64xf32> to vector<16x64xf32>
    %77 = arith.addf %73, %76 : vector<16x64xf32>
    %78 = vector.shape_cast %77 : vector<16x64xf32> to vector<2x8x64xf32>
    %79 = arith.addf %0, %78 : vector<2x8x64xf32>
    %80 = vector.shape_cast %79 : vector<2x8x64xf32> to vector<16x64xf32>
    %c0_47 = arith.constant 0 : index
    %c0_48 = arith.constant 0 : index
    %c0_49 = arith.constant 0 : index
    %81 = vector.load %arg13[%c0_47, %c0_48, %c0_49] : memref<2x1x64xf32, #tpu.memory_space<vmem>>, vector<1x1x64xf32>
    %82 = vector.shape_cast %81 : vector<1x1x64xf32> to vector<1x64xf32>
    %c0_50 = arith.constant 0 : index
    %c0_51 = arith.constant 0 : index
    %c0_52 = arith.constant 0 : index
    %83 = vector.load %arg14[%c0_50, %c0_51, %c0_52] : memref<2x1x64xf32, #tpu.memory_space<vmem>>, vector<1x1x64xf32>
    %84 = vector.shape_cast %83 : vector<1x1x64xf32> to vector<1x64xf32>
    %cst_53 = arith.constant dense<0.000000e+00> : vector<16xf32>
    %85 = vector.multi_reduction <add>, %80, %cst_53 [1] : vector<16x64xf32> to vector<16xf32>
    %86 = vector.shape_cast %85 : vector<16xf32> to vector<16x1xf32>
    %cst_54 = arith.constant 6.400000e+01 : f32
    %87 = vector.broadcast %cst_54 : f32 to vector<16x1xf32>
    %88 = arith.divf %86, %87 : vector<16x1xf32>
    %89 = vector.broadcast %88 : vector<16x1xf32> to vector<16x64xf32>
    %90 = arith.subf %80, %89 : vector<16x64xf32>
    %91 = arith.mulf %90, %90 : vector<16x64xf32>
    %cst_55 = arith.constant dense<0.000000e+00> : vector<16xf32>
    %92 = vector.multi_reduction <add>, %91, %cst_55 [1] : vector<16x64xf32> to vector<16xf32>
    %93 = vector.shape_cast %92 : vector<16xf32> to vector<16x1xf32>
    %cst_56 = arith.constant 6.400000e+01 : f32
    %94 = vector.broadcast %cst_56 : f32 to vector<16x1xf32>
    %95 = arith.divf %93, %94 : vector<16x1xf32>
    %96 = vector.broadcast %88 : vector<16x1xf32> to vector<16x64xf32>
    %97 = arith.subf %80, %96 : vector<16x64xf32>
    %cst_57 = arith.constant 9.99999974E-6 : f32
    %98 = vector.broadcast %cst_57 : f32 to vector<16x1xf32>
    %99 = arith.addf %95, %98 : vector<16x1xf32>
    %100 = math.rsqrt %99 : vector<16x1xf32>
    %101 = vector.broadcast %100 : vector<16x1xf32> to vector<16x64xf32>
    %102 = arith.mulf %97, %101 : vector<16x64xf32>
    %103 = vector.broadcast %82 : vector<1x64xf32> to vector<16x64xf32>
    %104 = arith.mulf %102, %103 : vector<16x64xf32>
    %105 = vector.broadcast %84 : vector<1x64xf32> to vector<16x64xf32>
    %106 = arith.addf %104, %105 : vector<16x64xf32>
    %c0_58 = arith.constant 0 : index
    %c0_59 = arith.constant 0 : index
    %c0_60 = arith.constant 0 : index
    %107 = vector.load %arg15[%c0_58, %c0_59, %c0_60] : memref<2x64x256xf32, #tpu.memory_space<vmem>>, vector<1x64x256xf32>
    %108 = vector.shape_cast %107 : vector<1x64x256xf32> to vector<64x256xf32>
    %cst_61 = arith.constant dense<0.000000e+00> : vector<16x256xf32>
    %109 = tpu.matmul %106, %108, %cst_61 {dimension_numbers = #tpu.dot_dimension_numbers<[1], [0], [0], [1], [0, 0, 1, 1], [], []>} : vector<16x64xf32>, vector<64x256xf32>, vector<16x256xf32> -> vector<16x256xf32>
    %c0_62 = arith.constant 0 : index
    %c0_63 = arith.constant 0 : index
    %c0_64 = arith.constant 0 : index
    %110 = vector.load %arg16[%c0_62, %c0_63, %c0_64] : memref<2x1x256xf32, #tpu.memory_space<vmem>>, vector<1x1x256xf32>
    %111 = vector.shape_cast %110 : vector<1x1x256xf32> to vector<1x256xf32>
    %112 = vector.broadcast %111 : vector<1x256xf32> to vector<16x256xf32>
    %113 = arith.addf %109, %112 : vector<16x256xf32>
    %cst_65 = arith.constant 1.702000e+00 : f32
    %114 = vector.broadcast %cst_65 : f32 to vector<16x256xf32>
    %115 = arith.mulf %114, %113 : vector<16x256xf32>
    %116 = arith.negf %115 : vector<16x256xf32>
    %117 = math.exp %116 : vector<16x256xf32>
    %cst_66 = arith.constant 1.000000e+00 : f32
    %118 = vector.broadcast %cst_66 : f32 to vector<16x256xf32>
    %119 = arith.addf %118, %117 : vector<16x256xf32>
    %120 = arith.divf %118, %119 : vector<16x256xf32>
    %121 = arith.mulf %113, %120 : vector<16x256xf32>
    %c0_67 = arith.constant 0 : index
    %c0_68 = arith.constant 0 : index
    %c0_69 = arith.constant 0 : index
    %122 = vector.load %arg17[%c0_67, %c0_68, %c0_69] : memref<2x256x64xf32, #tpu.memory_space<vmem>>, vector<1x256x64xf32>
    %123 = vector.shape_cast %122 : vector<1x256x64xf32> to vector<256x64xf32>
    %cst_70 = arith.constant dense<0.000000e+00> : vector<16x64xf32>
    %124 = tpu.matmul %121, %123, %cst_70 {dimension_numbers = #tpu.dot_dimension_numbers<[1], [0], [0], [1], [0, 0, 1, 1], [], []>} : vector<16x256xf32>, vector<256x64xf32>, vector<16x64xf32> -> vector<16x64xf32>
    %c0_71 = arith.constant 0 : index
    %c0_72 = arith.constant 0 : index
    %c0_73 = arith.constant 0 : index
    %125 = vector.load %arg18[%c0_71, %c0_72, %c0_73] : memref<2x1x64xf32, #tpu.memory_space<vmem>>, vector<1x1x64xf32>
    %126 = vector.shape_cast %125 : vector<1x1x64xf32> to vector<1x64xf32>
    %127 = vector.broadcast %126 : vector<1x64xf32> to vector<16x64xf32>
    %128 = arith.addf %124, %127 : vector<16x64xf32>
    %129 = vector.shape_cast %128 : vector<16x64xf32> to vector<2x8x64xf32>
    %130 = arith.addf %79, %129 : vector<2x8x64xf32>
    %131 = vector.shape_cast %130 : vector<2x8x64xf32> to vector<16x64xf32>
    %c1 = arith.constant 1 : index
    %c0_74 = arith.constant 0 : index
    %c0_75 = arith.constant 0 : index
    %132 = vector.load %arg11[%c1, %c0_74, %c0_75] : memref<2x1x64xf32, #tpu.memory_space<vmem>>, vector<1x1x64xf32>
    %133 = vector.shape_cast %132 : vector<1x1x64xf32> to vector<1x64xf32>
    %c1_76 = arith.constant 1 : index
    %c0_77 = arith.constant 0 : index
    %c0_78 = arith.constant 0 : index
    %134 = vector.load %arg12[%c1_76, %c0_77, %c0_78] : memref<2x1x64xf32, #tpu.memory_space<vmem>>, vector<1x1x64xf32>
    %135 = vector.shape_cast %134 : vector<1x1x64xf32> to vector<1x64xf32>
    %cst_79 = arith.constant dense<0.000000e+00> : vector<16xf32>
    %136 = vector.multi_reduction <add>, %131, %cst_79 [1] : vector<16x64xf32> to vector<16xf32>
    %137 = vector.shape_cast %136 : vector<16xf32> to vector<16x1xf32>
    %cst_80 = arith.constant 6.400000e+01 : f32
    %138 = vector.broadcast %cst_80 : f32 to vector<16x1xf32>
    %139 = arith.divf %137, %138 : vector<16x1xf32>
    %140 = vector.broadcast %139 : vector<16x1xf32> to vector<16x64xf32>
    %141 = arith.subf %131, %140 : vector<16x64xf32>
    %142 = arith.mulf %141, %141 : vector<16x64xf32>
    %cst_81 = arith.constant dense<0.000000e+00> : vector<16xf32>
    %143 = vector.multi_reduction <add>, %142, %cst_81 [1] : vector<16x64xf32> to vector<16xf32>
    %144 = vector.shape_cast %143 : vector<16xf32> to vector<16x1xf32>
    %cst_82 = arith.constant 6.400000e+01 : f32
    %145 = vector.broadcast %cst_82 : f32 to vector<16x1xf32>
    %146 = arith.divf %144, %145 : vector<16x1xf32>
    %147 = vector.broadcast %139 : vector<16x1xf32> to vector<16x64xf32>
    %148 = arith.subf %131, %147 : vector<16x64xf32>
    %cst_83 = arith.constant 9.99999974E-6 : f32
    %149 = vector.broadcast %cst_83 : f32 to vector<16x1xf32>
    %150 = arith.addf %146, %149 : vector<16x1xf32>
    %151 = math.rsqrt %150 : vector<16x1xf32>
    %152 = vector.broadcast %151 : vector<16x1xf32> to vector<16x64xf32>
    %153 = arith.mulf %148, %152 : vector<16x64xf32>
    %154 = vector.broadcast %133 : vector<1x64xf32> to vector<16x64xf32>
    %155 = arith.mulf %153, %154 : vector<16x64xf32>
    %156 = vector.broadcast %135 : vector<1x64xf32> to vector<16x64xf32>
    %157 = arith.addf %155, %156 : vector<16x64xf32>
    %c1_84 = arith.constant 1 : index
    %c0_85 = arith.constant 0 : index
    %c0_86 = arith.constant 0 : index
    %158 = vector.load %arg3[%c1_84, %c0_85, %c0_86] : memref<2x64x64xf32, #tpu.memory_space<vmem>>, vector<1x64x64xf32>
    %159 = vector.shape_cast %158 : vector<1x64x64xf32> to vector<64x64xf32>
    %cst_87 = arith.constant dense<0.000000e+00> : vector<16x64xf32>
    %160 = tpu.matmul %157, %159, %cst_87 {dimension_numbers = #tpu.dot_dimension_numbers<[1], [0], [0], [1], [0, 0, 1, 1], [], []>} : vector<16x64xf32>, vector<64x64xf32>, vector<16x64xf32> -> vector<16x64xf32>
    %c1_88 = arith.constant 1 : index
    %c0_89 = arith.constant 0 : index
    %c0_90 = arith.constant 0 : index
    %161 = vector.load %arg4[%c1_88, %c0_89, %c0_90] : memref<2x1x64xf32, #tpu.memory_space<vmem>>, vector<1x1x64xf32>
    %162 = vector.shape_cast %161 : vector<1x1x64xf32> to vector<1x64xf32>
    %163 = vector.broadcast %162 : vector<1x64xf32> to vector<16x64xf32>
    %164 = arith.addf %160, %163 : vector<16x64xf32>
    %165 = vector.shape_cast %164 : vector<16x64xf32> to vector<2x8x64xf32>
    %c1_91 = arith.constant 1 : index
    %c0_92 = arith.constant 0 : index
    %c0_93 = arith.constant 0 : index
    %166 = vector.load %arg5[%c1_91, %c0_92, %c0_93] : memref<2x64x64xf32, #tpu.memory_space<vmem>>, vector<1x64x64xf32>
    %167 = vector.shape_cast %166 : vector<1x64x64xf32> to vector<64x64xf32>
    %cst_94 = arith.constant dense<0.000000e+00> : vector<16x64xf32>
    %168 = tpu.matmul %157, %167, %cst_94 {dimension_numbers = #tpu.dot_dimension_numbers<[1], [0], [0], [1], [0, 0, 1, 1], [], []>} : vector<16x64xf32>, vector<64x64xf32>, vector<16x64xf32> -> vector<16x64xf32>
    %c1_95 = arith.constant 1 : index
    %c0_96 = arith.constant 0 : index
    %c0_97 = arith.constant 0 : index
    %169 = vector.load %arg6[%c1_95, %c0_96, %c0_97] : memref<2x1x64xf32, #tpu.memory_space<vmem>>, vector<1x1x64xf32>
    %170 = vector.shape_cast %169 : vector<1x1x64xf32> to vector<1x64xf32>
    %171 = vector.broadcast %170 : vector<1x64xf32> to vector<16x64xf32>
    %172 = arith.addf %168, %171 : vector<16x64xf32>
    %173 = vector.shape_cast %172 : vector<16x64xf32> to vector<2x8x64xf32>
    %c1_98 = arith.constant 1 : index
    %c0_99 = arith.constant 0 : index
    %c0_100 = arith.constant 0 : index
    %174 = vector.load %arg7[%c1_98, %c0_99, %c0_100] : memref<2x64x64xf32, #tpu.memory_space<vmem>>, vector<1x64x64xf32>
    %175 = vector.shape_cast %174 : vector<1x64x64xf32> to vector<64x64xf32>
    %cst_101 = arith.constant dense<0.000000e+00> : vector<16x64xf32>
    %176 = tpu.matmul %157, %175, %cst_101 {dimension_numbers = #tpu.dot_dimension_numbers<[1], [0], [0], [1], [0, 0, 1, 1], [], []>} : vector<16x64xf32>, vector<64x64xf32>, vector<16x64xf32> -> vector<16x64xf32>
    %c1_102 = arith.constant 1 : index
    %c0_103 = arith.constant 0 : index
    %c0_104 = arith.constant 0 : index
    %177 = vector.load %arg8[%c1_102, %c0_103, %c0_104] : memref<2x1x64xf32, #tpu.memory_space<vmem>>, vector<1x1x64xf32>
    %178 = vector.shape_cast %177 : vector<1x1x64xf32> to vector<1x64xf32>
    %179 = vector.broadcast %178 : vector<1x64xf32> to vector<16x64xf32>
    %180 = arith.addf %176, %179 : vector<16x64xf32>
    %181 = vector.shape_cast %180 : vector<16x64xf32> to vector<2x8x64xf32>
    "tpu.trace_start"() <{level = 10 : i32, message = "bqd,bkd->bqk"}> : () -> ()
    %cst_105 = arith.constant dense<0.000000e+00> : vector<2x8x8xf32>
    %182 = tpu.matmul %165, %173, %cst_105 {dimension_numbers = #tpu.dot_dimension_numbers<[2], [2], [1], [1], [0, 0, 0, 1, 1, 1], [0], [0]>} : vector<2x8x64xf32>, vector<2x8x64xf32>, vector<2x8x8xf32> -> vector<2x8x8xf32>
    "tpu.trace_stop"() : () -> ()
    %cst_106 = arith.constant 1.250000e-01 : f32
    %183 = vector.broadcast %cst_106 : f32 to vector<2x8x8xf32>
    %184 = arith.mulf %182, %183 : vector<2x8x8xf32>
    %185 = vector.shape_cast %1 : vector<8x8xf32> to vector<1x8x8xf32>
    %186 = vector.broadcast %185 : vector<1x8x8xf32> to vector<2x8x8xf32>
    %187 = arith.addf %184, %186 : vector<2x8x8xf32>
    %cst_107 = arith.constant dense<0xFF800000> : vector<2x8xf32>
    %188 = vector.multi_reduction <maximumf>, %187, %cst_107 [2] : vector<2x8x8xf32> to vector<2x8xf32>
    %189 = vector.shape_cast %188 : vector<2x8xf32> to vector<2x8x1xf32>
    %190 = vector.broadcast %189 : vector<2x8x1xf32> to vector<2x8x8xf32>
    %191 = arith.subf %187, %190 : vector<2x8x8xf32>
    %192 = math.exp %191 : vector<2x8x8xf32>
    %cst_108 = arith.constant dense<0.000000e+00> : vector<2x8xf32>
    %193 = vector.multi_reduction <add>, %192, %cst_108 [2] : vector<2x8x8xf32> to vector<2x8xf32>
    %194 = vector.shape_cast %193 : vector<2x8xf32> to vector<2x8x1xf32>
    %195 = tpu.reciprocal %194 {approx = true} : vector<2x8x1xf32> -> vector<2x8x1xf32>
    %196 = vector.broadcast %195 : vector<2x8x1xf32> to vector<2x8x8xf32>
    %197 = arith.mulf %192, %196 : vector<2x8x8xf32>
    "tpu.trace_start"() <{level = 10 : i32, message = "bqk,bkd->bqd"}> : () -> ()
    %cst_109 = arith.constant dense<0.000000e+00> : vector<2x8x64xf32>
    %198 = tpu.matmul %197, %181, %cst_109 {dimension_numbers = #tpu.dot_dimension_numbers<[2], [1], [1], [2], [0, 0, 0, 1, 1, 2], [0], [0]>} : vector<2x8x8xf32>, vector<2x8x64xf32>, vector<2x8x64xf32> -> vector<2x8x64xf32>
    "tpu.trace_stop"() : () -> ()
    %199 = vector.shape_cast %198 : vector<2x8x64xf32> to vector<16x64xf32>
    %c1_110 = arith.constant 1 : index
    %c0_111 = arith.constant 0 : index
    %c0_112 = arith.constant 0 : index
    %200 = vector.load %arg9[%c1_110, %c0_111, %c0_112] : memref<2x64x64xf32, #tpu.memory_space<vmem>>, vector<1x64x64xf32>
    %201 = vector.shape_cast %200 : vector<1x64x64xf32> to vector<64x64xf32>
    %cst_113 = arith.constant dense<0.000000e+00> : vector<16x64xf32>
    %202 = tpu.matmul %199, %201, %cst_113 {dimension_numbers = #tpu.dot_dimension_numbers<[1], [0], [0], [1], [0, 0, 1, 1], [], []>} : vector<16x64xf32>, vector<64x64xf32>, vector<16x64xf32> -> vector<16x64xf32>
    %c1_114 = arith.constant 1 : index
    %c0_115 = arith.constant 0 : index
    %c0_116 = arith.constant 0 : index
    %203 = vector.load %arg10[%c1_114, %c0_115, %c0_116] : memref<2x1x64xf32, #tpu.memory_space<vmem>>, vector<1x1x64xf32>
    %204 = vector.shape_cast %203 : vector<1x1x64xf32> to vector<1x64xf32>
    %205 = vector.broadcast %204 : vector<1x64xf32> to vector<16x64xf32>
    %206 = arith.addf %202, %205 : vector<16x64xf32>
    %207 = vector.shape_cast %206 : vector<16x64xf32> to vector<2x8x64xf32>
    %208 = arith.addf %130, %207 : vector<2x8x64xf32>
    %209 = vector.shape_cast %208 : vector<2x8x64xf32> to vector<16x64xf32>
    %c1_117 = arith.constant 1 : index
    %c0_118 = arith.constant 0 : index
    %c0_119 = arith.constant 0 : index
    %210 = vector.load %arg13[%c1_117, %c0_118, %c0_119] : memref<2x1x64xf32, #tpu.memory_space<vmem>>, vector<1x1x64xf32>
    %211 = vector.shape_cast %210 : vector<1x1x64xf32> to vector<1x64xf32>
    %c1_120 = arith.constant 1 : index
    %c0_121 = arith.constant 0 : index
    %c0_122 = arith.constant 0 : index
    %212 = vector.load %arg14[%c1_120, %c0_121, %c0_122] : memref<2x1x64xf32, #tpu.memory_space<vmem>>, vector<1x1x64xf32>
    %213 = vector.shape_cast %212 : vector<1x1x64xf32> to vector<1x64xf32>
    %cst_123 = arith.constant dense<0.000000e+00> : vector<16xf32>
    %214 = vector.multi_reduction <add>, %209, %cst_123 [1] : vector<16x64xf32> to vector<16xf32>
    %215 = vector.shape_cast %214 : vector<16xf32> to vector<16x1xf32>
    %cst_124 = arith.constant 6.400000e+01 : f32
    %216 = vector.broadcast %cst_124 : f32 to vector<16x1xf32>
    %217 = arith.divf %215, %216 : vector<16x1xf32>
    %218 = vector.broadcast %217 : vector<16x1xf32> to vector<16x64xf32>
    %219 = arith.subf %209, %218 : vector<16x64xf32>
    %220 = arith.mulf %219, %219 : vector<16x64xf32>
    %cst_125 = arith.constant dense<0.000000e+00> : vector<16xf32>
    %221 = vector.multi_reduction <add>, %220, %cst_125 [1] : vector<16x64xf32> to vector<16xf32>
    %222 = vector.shape_cast %221 : vector<16xf32> to vector<16x1xf32>
    %cst_126 = arith.constant 6.400000e+01 : f32
    %223 = vector.broadcast %cst_126 : f32 to vector<16x1xf32>
    %224 = arith.divf %222, %223 : vector<16x1xf32>
    %225 = vector.broadcast %217 : vector<16x1xf32> to vector<16x64xf32>
    %226 = arith.subf %209, %225 : vector<16x64xf32>
    %cst_127 = arith.constant 9.99999974E-6 : f32
    %227 = vector.broadcast %cst_127 : f32 to vector<16x1xf32>
    %228 = arith.addf %224, %227 : vector<16x1xf32>
    %229 = math.rsqrt %228 : vector<16x1xf32>
    %230 = vector.broadcast %229 : vector<16x1xf32> to vector<16x64xf32>
    %231 = arith.mulf %226, %230 : vector<16x64xf32>
    %232 = vector.broadcast %211 : vector<1x64xf32> to vector<16x64xf32>
    %233 = arith.mulf %231, %232 : vector<16x64xf32>
    %234 = vector.broadcast %213 : vector<1x64xf32> to vector<16x64xf32>
    %235 = arith.addf %233, %234 : vector<16x64xf32>
    %c1_128 = arith.constant 1 : index
    %c0_129 = arith.constant 0 : index
    %c0_130 = arith.constant 0 : index
    %236 = vector.load %arg15[%c1_128, %c0_129, %c0_130] : memref<2x64x256xf32, #tpu.memory_space<vmem>>, vector<1x64x256xf32>
    %237 = vector.shape_cast %236 : vector<1x64x256xf32> to vector<64x256xf32>
    %cst_131 = arith.constant dense<0.000000e+00> : vector<16x256xf32>
    %238 = tpu.matmul %235, %237, %cst_131 {dimension_numbers = #tpu.dot_dimension_numbers<[1], [0], [0], [1], [0, 0, 1, 1], [], []>} : vector<16x64xf32>, vector<64x256xf32>, vector<16x256xf32> -> vector<16x256xf32>
    %c1_132 = arith.constant 1 : index
    %c0_133 = arith.constant 0 : index
    %c0_134 = arith.constant 0 : index
    %239 = vector.load %arg16[%c1_132, %c0_133, %c0_134] : memref<2x1x256xf32, #tpu.memory_space<vmem>>, vector<1x1x256xf32>
    %240 = vector.shape_cast %239 : vector<1x1x256xf32> to vector<1x256xf32>
    %241 = vector.broadcast %240 : vector<1x256xf32> to vector<16x256xf32>
    %242 = arith.addf %238, %241 : vector<16x256xf32>
    %cst_135 = arith.constant 1.702000e+00 : f32
    %243 = vector.broadcast %cst_135 : f32 to vector<16x256xf32>
    %244 = arith.mulf %243, %242 : vector<16x256xf32>
    %245 = arith.negf %244 : vector<16x256xf32>
    %246 = math.exp %245 : vector<16x256xf32>
    %cst_136 = arith.constant 1.000000e+00 : f32
    %247 = vector.broadcast %cst_136 : f32 to vector<16x256xf32>
    %248 = arith.addf %247, %246 : vector<16x256xf32>
    %249 = arith.divf %247, %248 : vector<16x256xf32>
    %250 = arith.mulf %242, %249 : vector<16x256xf32>
    %c1_137 = arith.constant 1 : index
    %c0_138 = arith.constant 0 : index
    %c0_139 = arith.constant 0 : index
    %251 = vector.load %arg17[%c1_137, %c0_138, %c0_139] : memref<2x256x64xf32, #tpu.memory_space<vmem>>, vector<1x256x64xf32>
    %252 = vector.shape_cast %251 : vector<1x256x64xf32> to vector<256x64xf32>
    %cst_140 = arith.constant dense<0.000000e+00> : vector<16x64xf32>
    %253 = tpu.matmul %250, %252, %cst_140 {dimension_numbers = #tpu.dot_dimension_numbers<[1], [0], [0], [1], [0, 0, 1, 1], [], []>} : vector<16x256xf32>, vector<256x64xf32>, vector<16x64xf32> -> vector<16x64xf32>
    %c1_141 = arith.constant 1 : index
    %c0_142 = arith.constant 0 : index
    %c0_143 = arith.constant 0 : index
    %254 = vector.load %arg18[%c1_141, %c0_142, %c0_143] : memref<2x1x64xf32, #tpu.memory_space<vmem>>, vector<1x1x64xf32>
    %255 = vector.shape_cast %254 : vector<1x1x64xf32> to vector<1x64xf32>
    %256 = vector.broadcast %255 : vector<1x64xf32> to vector<16x64xf32>
    %257 = arith.addf %253, %256 : vector<16x64xf32>
    %258 = vector.shape_cast %257 : vector<16x64xf32> to vector<2x8x64xf32>
    %259 = arith.addf %208, %258 : vector<2x8x64xf32>
    %260 = vector.shape_cast %259 : vector<2x8x64xf32> to vector<16x64xf32>
    %c0_144 = arith.constant 0 : index
    %c0_145 = arith.constant 0 : index
    %261 = vector.load %arg19[%c0_144, %c0_145] : memref<1x64xf32, #tpu.memory_space<vmem>>, vector<1x64xf32>
    %c0_146 = arith.constant 0 : index
    %c0_147 = arith.constant 0 : index
    %262 = vector.load %arg20[%c0_146, %c0_147] : memref<1x64xf32, #tpu.memory_space<vmem>>, vector<1x64xf32>
    %cst_148 = arith.constant dense<0.000000e+00> : vector<16xf32>
    %263 = vector.multi_reduction <add>, %260, %cst_148 [1] : vector<16x64xf32> to vector<16xf32>
    %264 = vector.shape_cast %263 : vector<16xf32> to vector<16x1xf32>
    %cst_149 = arith.constant 6.400000e+01 : f32
    %265 = vector.broadcast %cst_149 : f32 to vector<16x1xf32>
    %266 = arith.divf %264, %265 : vector<16x1xf32>
    %267 = vector.broadcast %266 : vector<16x1xf32> to vector<16x64xf32>
    %268 = arith.subf %260, %267 : vector<16x64xf32>
    %269 = arith.mulf %268, %268 : vector<16x64xf32>
    %cst_150 = arith.constant dense<0.000000e+00> : vector<16xf32>
    %270 = vector.multi_reduction <add>, %269, %cst_150 [1] : vector<16x64xf32> to vector<16xf32>
    %271 = vector.shape_cast %270 : vector<16xf32> to vector<16x1xf32>
    %cst_151 = arith.constant 6.400000e+01 : f32
    %272 = vector.broadcast %cst_151 : f32 to vector<16x1xf32>
    %273 = arith.divf %271, %272 : vector<16x1xf32>
    %274 = vector.broadcast %266 : vector<16x1xf32> to vector<16x64xf32>
    %275 = arith.subf %260, %274 : vector<16x64xf32>
    %cst_152 = arith.constant 9.99999974E-6 : f32
    %276 = vector.broadcast %cst_152 : f32 to vector<16x1xf32>
    %277 = arith.addf %273, %276 : vector<16x1xf32>
    %278 = math.rsqrt %277 : vector<16x1xf32>
    %279 = vector.broadcast %278 : vector<16x1xf32> to vector<16x64xf32>
    %280 = arith.mulf %275, %279 : vector<16x64xf32>
    %281 = vector.broadcast %261 : vector<1x64xf32> to vector<16x64xf32>
    %282 = arith.mulf %280, %281 : vector<16x64xf32>
    %283 = vector.broadcast %262 : vector<1x64xf32> to vector<16x64xf32>
    %284 = arith.addf %282, %283 : vector<16x64xf32>
    %285 = vector.shape_cast %284 : vector<16x64xf32> to vector<2x8x64xf32>
    %c0_153 = arith.constant 0 : index
    %c0_154 = arith.constant 0 : index
    %c0_155 = arith.constant 0 : index
    %286 = vector.load %arg22[%c0_153, %c0_154, %c0_155] : memref<2x8x64xf32, #tpu.memory_space<vmem>>, vector<2x8x64xf32>
    tpu.vector_store %arg22[%c0_153, %c0_154, %c0_155], %285 {strides = array<i32>} : memref<2x8x64xf32, #tpu.memory_space<vmem>>, vector<2x8x64xf32>,
    %c0_156 = arith.constant 0 : index
    %c0_157 = arith.constant 0 : index
    %287 = vector.load %arg2[%c0_156, %c0_157] : memref<2x8xf32, #tpu.memory_space<vmem>>, vector<2x8xf32>
    %288 = vector.shape_cast %287 : vector<2x8xf32> to vector<2x8x1xf32>
    %289 = vector.broadcast %288 : vector<2x8x1xf32> to vector<2x8x64xf32>
    %290 = arith.mulf %285, %289 : vector<2x8x64xf32>
    %cst_158 = arith.constant dense<0.000000e+00> : vector<2x64xf32>
    %291 = vector.multi_reduction <add>, %290, %cst_158 [1] : vector<2x8x64xf32> to vector<2x64xf32>
    %c0_159 = arith.constant 0 : index
    %c0_160 = arith.constant 0 : index
    %292 = vector.load %arg21[%c0_159, %c0_160] : memref<64x64xf32, #tpu.memory_space<vmem>>, vector<64x64xf32>
    %cst_161 = arith.constant dense<0.000000e+00> : vector<2x64xf32>
    %293 = tpu.matmul %291, %292, %cst_161 {dimension_numbers = #tpu.dot_dimension_numbers<[1], [0], [0], [1], [0, 0, 1, 1], [], []>} : vector<2x64xf32>, vector<64x64xf32>, vector<2x64xf32> -> vector<2x64xf32>
    %c0_162 = arith.constant 0 : index
    %c0_163 = arith.constant 0 : index
    %294 = vector.load %arg23[%c0_162, %c0_163] : memref<2x64xf32, #tpu.memory_space<vmem>>, vector<2x64xf32>
    tpu.vector_store %arg23[%c0_162, %c0_163], %293 {strides = array<i32>} : memref<2x64xf32, #tpu.memory_space<vmem>>, vector<2x64xf32>,
    return
  }
}

</mosaic_0001>

<bundles_post_ra>
// kernel: tpu_custom_call.1
= control target key start
LH: loop header
LB: loop body
LE: loop exit
PB: predicated region body
PF: predicated region fallthrough
CT: control target
= control target key end

     0   :  { %s3146_s0 = inlined_call_operand.hbm [shape: f32[2,8,64], index: 0, kind: input, shape index: {}]   ;;  %s3147_s1 = inlined_call_operand.hbm [shape: f32[8,8], index: 1, kind: input, shape index: {}]   ;;  %s3148_s2 = inlined_call_operand.hbm [shape: f32[2,8], index: 2, kind: input, shape index: {}]   ;;  %s3149_s3 = inlined_call_operand.vmem [shape: f32[2,64,64], index: 3, kind: input, shape index: {}]   ;;  %s3150_s4 = inlined_call_operand.hbm [shape: f32[2,1,64], index: 4, kind: input, shape index: {}]   ;;  %s3151_s5 = inlined_call_operand.vmem [shape: f32[2,64,64], index: 5, kind: input, shape index: {}]   ;;  %s3152_s6 = inlined_call_operand.hbm [shape: f32[2,1,64], index: 6, kind: input, shape index: {}]   ;;  %s3153_s7 = inlined_call_operand.vmem [shape: f32[2,64,64], index: 7, kind: input, shape index: {}]   ;;  %s3154_s8 = inlined_call_operand.hbm [shape: f32[2,1,64], index: 8, kind: input, shape index: {}]   ;;  %s3155_s9 = inlined_call_operand.vmem [shape: f32[2,64,64], index: 9, kind: input, shape index: {}]   ;;  %s3156_s10 = inlined_call_operand.vmem [shape: f32[2,1,64], index: 10, kind: input, shape index: {}]   ;;  %s3157_s11 = inlined_call_operand.vmem [shape: f32[2,1,64], index: 11, kind: input, shape index: {}]   ;;  %s3158_s12 = inlined_call_operand.hbm [shape: f32[2,1,64], index: 12, kind: input, shape index: {}]   ;;  %s3159_s13 = inlined_call_operand.hbm [shape: f32[2,1,64], index: 13, kind: input, shape index: {}]   ;;  %s3160_s14 = inlined_call_operand.hbm [shape: f32[2,1,64], index: 14, kind: input, shape index: {}]   ;;  %s3161_s15 = inlined_call_operand.vmem [shape: f32[2,64,256], index: 15, kind: input, shape index: {}]   ;;  %s3162_s16 = inlined_call_operand.vmem [shape: f32[2,1,256], index: 16, kind: input, shape index: {}]   ;;  %s3163_s17 = inlined_call_operand.vmem [shape: f32[2,256,64], index: 17, kind: input, shape index: {}]   ;;  %s3164_s18 = inlined_call_operand.vmem [shape: f32[2,1,64], index: 18, kind: input, shape index: {}]   ;;  %s3165_s19 = inlined_call_operand.vmem [shape: f32[1,64], index: 19, kind: input, shape index: {}]   ;;  %s3166_s20 = inlined_call_operand.vmem [shape: f32[1,64], index: 20, kind: input, shape index: {}]   ;;  %s3167_s21 = inlined_call_operand.hbm [shape: f32[64,64], index: 21, kind: input, shape index: {}]   ;;  %s3168_s22 = inlined_call_operand.hbm [shape: f32[2,8,64], index: 22, kind: output, shape index: {0}]   ;;  %s3169_s23 = inlined_call_operand.hbm [shape: f32[2,64], index: 23, kind: output, shape index: {1}]  }
   0x1   :  { %3173 = sst [smem:[#allocation30_spill]] %s3146_s0 }
   0x2   :  { %3174 = sst [smem:[#allocation31_spill]] %s3147_s1 }
   0x3   :  { %3175 = sst [smem:[#allocation32_spill]] %s3148_s2 }
   0x4   :  { %3176 = sst [smem:[#allocation33_spill]] %s3149_s3 }
   0x5   :  { %3177 = sst [smem:[#allocation34_spill]] %s3150_s4 }
   0x6   :  { %3178 = sst [smem:[#allocation35_spill]] %s3151_s5 }
   0x7   :  { %3179 = sst [smem:[#allocation36_spill]] %s3152_s6 }
   0x8   :  { %3180 = sst [smem:[#allocation37_spill]] %s3153_s7 }
   0x9   :  { %3181 = sst [smem:[#allocation38_spill]] %s3169_s23 }
   0xa   :  { %29 = vsyncpa [#allocation3], 0 }
   0xb   :  { %30 = vsyncpa [#allocation6], 0 }
   0xc   :  { %31 = vsyncpa [#allocation9], 0 }
   0xd   :  { %32 = vsyncpa [#allocation12], 0 }
   0xe   :  { %33 = vsyncpa [#allocation15], 0 }
   0xf   :  { %34 = vsyncpa [#allocation18], 0 }
  0x10   :  { %35 = vsyncpa [#allocation4], 0  ;;  %s3182_s24 = sld [smem:[#allocation31_spill]] }
  0x16   :  { %s55_s25 = sshll.u32 %s3182_s24, 4  ;;  %s56_s25 = int_to_ptr.hbm [resolvable:$true] %s55_s25 }
  0x17   :  { %36 = vsyncpa [#allocation21], 0  ;;  %s2227_s5 = smov [#allocation5]   ;;  %s3183_s6 = sld [smem:[#allocation34_spill]] }
  0x18   :  { %s57_s1 = sshll.u32 %s2227_s5, 4  ;;  %s2228_s7 = smov [#allocation8]   ;;  %s58_s1 = int_to_ptr.vmem [resolvable:$true] %s57_s1 }
  0x19   :  { %60 = dma.hbm_to_vmem [thread:$0]  %s56_s25, 128, %s58_s1, [#allocation6]  }
  0x1a   :  { %s80_s28 = sshll.u32 %s2228_s7, 4  ;;  %s2229_s29 = smov 16   ;;  %s81_s28 = int_to_ptr.vmem [resolvable:$true] %s80_s28 }
  0x1b   :  { %s2230_s3 = smov 1   ;;  %s108_s30 = sshll.u32 %s3154_s8, 4  ;;  %s109_s30 = int_to_ptr.hbm [resolvable:$true] %s108_s30 }
  0x1c   :  { %s2231_s24 = smov [#allocation11]   ;;  %s140_s1 = sshll.u32 %s3159_s13, 4  ;;  %s141_s1 = int_to_ptr.hbm [resolvable:$true] %s140_s1 }
  0x1d   :  { %s78_s27 = sshll.u32 %s3183_s6, 4  ;;  %s110_s5 = sshll.u32 %s2231_s24, 4  ;;  %s79_s27 = int_to_ptr.hbm [resolvable:$true] %s78_s27  ;;  %s111_s5 = int_to_ptr.vmem [resolvable:$true] %s110_s5 }
  0x1e   :  { %86 = dma.hbm_to_vmem [thread:$0]  %s79_s27, 32, %s81_s28, [#allocation9], %s2229_s29, %s2229_s29, %s2230_s3  }
  0x1f   :  { %116 = dma.hbm_to_vmem [thread:$0]  %s109_s30, 32, %s111_s5, [#allocation12], %s2229_s29, %s2229_s29, %s2230_s3  }
  0x20   :  { %s2232_s2 = smov [#allocation14]   ;;  %s3184_s28 = sld [smem:[#allocation30_spill]] }
  0x21   :  { %s142_s6 = sshll.u32 %s2232_s2, 4  ;;  %s2233_s8 = smov [#allocation2]   ;;  %s143_s6 = int_to_ptr.vmem [resolvable:$true] %s142_s6 }
  0x22   :  { %148 = dma.hbm_to_vmem [thread:$0]  %s141_s1, 32, %s143_s6, [#allocation15], %s2229_s29, %s2229_s29, %s2230_s3  }
  0x23   :  { %s43_s4 = sshll.u32 %s2233_s8, 4  ;;  %s3185_s26 = sld [smem:[#allocation32_spill]]  ;;  %s44_s4 = int_to_ptr.vmem [resolvable:$true] %s43_s4 }
  0x24   :  { %s2234_s5 = smov 128   ;;  %s2235_s25 = smov 8  }
  0x25   :  { %s2236_s2 = smov [#allocation7]   ;;  %s3186_s23 = sld [smem:[#allocation36_spill]] }
  0x26   :  { %s41_s0 = sshll.u32 %s3184_s28, 4  ;;  %s68_s27 = sshll.u32 %s2236_s2, 4  ;;  %s42_s0 = int_to_ptr.hbm [resolvable:$true] %s41_s0  ;;  %s69_s27 = int_to_ptr.vmem [resolvable:$true] %s68_s27 }
  0x27   :  { %49 = dma.hbm_to_vmem [thread:$0]  %s42_s0, 256, %s44_s4, [#allocation3], %s2234_s5, %s2234_s5, %s2235_s25  }
  0x28   :  { %s127_s13 = sshll.u32 %s3158_s12, 4  ;;  %s2237_s24 = smov [#allocation10]   ;;  %s128_s13 = int_to_ptr.hbm [resolvable:$true] %s127_s13 }
  0x29   :  { %s66_s30 = sshll.u32 %s3185_s26, 4  ;;  %s95_s26 = sshll.u32 %s2237_s24, 4  ;;  %s67_s30 = int_to_ptr.hbm [resolvable:$true] %s66_s30  ;;  %s96_s26 = int_to_ptr.vmem [resolvable:$true] %s95_s26 }
  0x2a   :  { %71 = dma.hbm_to_vmem [thread:$0]  %s67_s30, 32, %s69_s27, [#allocation6]  }
  0x2b   :  { %s93_s1 = sshll.u32 %s3186_s23, 4  ;;  %s2238_s0 = smov [#allocation13]   ;;  %s94_s1 = int_to_ptr.hbm [resolvable:$true] %s93_s1 }
  0x2c   :  { %101 = dma.hbm_to_vmem [thread:$0]  %s94_s1, 32, %s96_s26, [#allocation9], %s2229_s29, %s2229_s29, %s2230_s3  }
  0x2d   :  { %s129_s4 = sshll.u32 %s2238_s0, 4  ;;  %s153_s23 = sshll.u32 %s3160_s14, 4  ;;  %s130_s4 = int_to_ptr.vmem [resolvable:$true] %s129_s4  ;;  %s154_s23 = int_to_ptr.hbm [resolvable:$true] %s153_s23 }
  0x2e   :  { %135 = dma.hbm_to_vmem [thread:$0]  %s128_s13, 32, %s130_s4, [#allocation12], %s2229_s29, %s2229_s29, %s2230_s3  }
  0x2f   :  { %s178_s27 = sshll.u32 %s3167_s21, 4  ;;  %s2239_s28 = smov [#allocation16]   ;;  %s179_s27 = int_to_ptr.hbm [resolvable:$true] %s178_s27 }
  0x30   :  { %s155_s6 = sshll.u32 %s2239_s28, 4  ;;  %s2240_s1 = smov [#allocation17]   ;;  %s156_s6 = int_to_ptr.vmem [resolvable:$true] %s155_s6 }
  0x31   :  { %161 = dma.hbm_to_vmem [thread:$0]  %s154_s23, 32, %s156_s6, [#allocation15], %s2229_s29, %s2229_s29, %s2230_s3  }
  0x32   :  { %s180_s14 = sshll.u32 %s2240_s1, 4  ;;  %s181_s14 = int_to_ptr.vmem [resolvable:$true] %s180_s14 }
  0x33   :  { %186 = dma.hbm_to_vmem [thread:$0]  %s179_s27, 1024, %s181_s14, [#allocation18], %s2234_s5, %s2234_s5, %s2235_s25  }
  0x34   :  { %2211 = dma.done.wait [#allocation3], 256  }
  0x35   :  { %2212 = vsyncadd [#allocation3], 4294967040 }
  0x36   :  { %2213 = dma.done.wait [#allocation6], 160  }
  0x37   :  { %2214 = vsyncadd [#allocation6], 4294967136 }
  0x38   :  { %2215 = dma.done.wait [#allocation9], 64  }
  0x39   :  { %2216 = vsyncadd [#allocation9], 4294967232 }
  0x3a   :  { %2217 = dma.done.wait [#allocation12], 64  }
  0x3b   :  { %2218 = vsyncadd [#allocation12], 4294967232 }
  0x3c   :  { %2219 = dma.done.wait [#allocation15], 64  }
  0x3d   :  { %2220 = vsyncadd [#allocation15], 4294967232 }
  0x3e   :  { %2221 = dma.done.wait [#allocation18], 1024  }
  0x3f   :  { %2222 = vsyncadd [#allocation18], 4294966272  ;;  %vm232_vm0 = vcmask 523264   ;;  %v2418_v0 = vld [vmem:[#allocation2] sm:$0xff]  ;;  %v2420_v1 = vld [vmem:[#allocation2 + $0x8] sm:$0xff]  ;;  %v2241_v4 = vmov 64.0  }
  0x40   :  { %v233_v2 = vsel %vm232_vm0, %v2418_v0, 0.0  ;;  %v236_v3 = vsel %vm232_vm0, %v2420_v1, 0.0  ;;  %1853 = vrcp.f32 %v2241_v4  ;;  %s3187_s3 = sld [smem:[#allocation33_spill]]  ;;  %v1833_v59 = vld [vmem:[%s3157_s11] ss:$0 sm:$0xff]  ;;  %vm461_vm8 = vcmask 64512  }
  0x41   :  { %234 = vadd.xlane.f32.xlu0 %v233_v2  ;;  %s3188_s24 = sld [smem:[#allocation35_spill]]  ;;  %v1834_v63 = vld [vmem:[#allocation13] ss:$0 sm:$0xff]  ;;  %s2242_s28 = smov [#allocation19]  }
  0x42   :  { %s3189_s4 = sld [smem:[#allocation37_spill]] }
  0x43   :  { %s3190_s14 = sld [smem:[#allocation38_spill]] }
  0x46   :  { %v1854_v5 = vpop.eup %1853  ;;  %v301_v21 = vld [vmem:[%s3187_s3 + $0x38] sm:$0xff]  ;;  %v300_v24 = vld [vmem:[%s3187_s3 + $0x30] sm:$0xff]  ;;  %v299_v27 = vld [vmem:[%s3187_s3 + $0x28] sm:$0xff] }
  0x47   :  { %v240_v6 = vmul.f32 64.0, %v1854_v5  ;;  %vm244_vm1 = vweird.f32 %v1854_v5  ;;  %v342_v22 = vld [vmem:[%s3188_s24 + $0x38] sm:$0xff]  ;;  %320 = vmatpush.msra.mxu0 %v301_v21  ;;  %v341_v25 = vld [vmem:[%s3188_s24 + $0x30] sm:$0xff]  ;;  %v340_v28 = vld [vmem:[%s3188_s24 + $0x28] sm:$0xff] }
  0x48   :  { %v377_v23 = vld [vmem:[%s3189_s4 + $0x38] sm:$0xff]  ;;  %355 = vmatpush.msra.mxu1 %v342_v22  ;;  %v376_v26 = vld [vmem:[%s3189_s4 + $0x30] sm:$0xff]  ;;  %v375_v29 = vld [vmem:[%s3189_s4 + $0x28] sm:$0xff] }
  0x49   :  { %237 = vadd.xlane.f32.xlu0 %v236_v3  ;;  %v241_v7 = vsub.f32 1.0, %v240_v6  ;;  %390 = vmatpush.msra.mxu2 %v377_v23  ;;  %v298_v30 = vld [vmem:[%s3187_s3 + $0x20] sm:$0xff]  ;;  %v297_v33 = vld [vmem:[%s3187_s3 + $0x18] sm:$0xff]  ;;  %v296_v36 = vld [vmem:[%s3187_s3 + $0x10] sm:$0xff]  ;;  %s1664_s21 = sshll.u32 %s3190_s14, 4  ;;  %s1665_s21 = int_to_ptr.hbm [resolvable:$true] %s1664_s21 }
  0x4a   :  { %321 = vmatpush.msra.mxu0 %v300_v24  ;;  %356 = vmatpush.msra.mxu1 %v341_v25  ;;  %v339_v31 = vld [vmem:[%s3188_s24 + $0x20] sm:$0xff]  ;;  %v338_v34 = vld [vmem:[%s3188_s24 + $0x18] sm:$0xff]  ;;  %v337_v37 = vld [vmem:[%s3188_s24 + $0x10] sm:$0xff] }
  0x4b   :  { %v242_v8 = vmul.f32 %v1854_v5, %v241_v7  ;;  %391 = vmatpush.msra.mxu2 %v376_v26  ;;  %v374_v32 = vld [vmem:[%s3189_s4 + $0x20] sm:$0xff]  ;;  %v373_v35 = vld [vmem:[%s3189_s4 + $0x18] sm:$0xff]  ;;  %v372_v38 = vld [vmem:[%s3189_s4 + $0x10] sm:$0xff] }
  0x4c   :  { %322 = vmatpush.msra.mxu0 %v299_v27  ;;  %357 = vmatpush.msra.mxu1 %v340_v28  ;;  %v295_v39 = vld [vmem:[%s3187_s3 + $0x8] sm:$0xff]  ;;  %v294_v42 = vld [vmem:[%s3187_s3] sm:$0xff]  ;;  %v2531_v28 = vld [vmem:[#allocation5] sm:$0xff] }
  0x4d   :  { %v243_v9 = vadd.f32 %v1854_v5, %v242_v8  ;;  %392 = vmatpush.msra.mxu2 %v375_v29  ;;  %v336_v40 = vld [vmem:[%s3188_s24 + $0x8] sm:$0xff]  ;;  %v335_v43 = vld [vmem:[%s3188_s24] sm:$0xff] }
  0x4e   :  { %323 = vmatpush.msra.mxu0 %v298_v30  ;;  %358 = vmatpush.msra.mxu1 %v339_v31  ;;  %v371_v41 = vld [vmem:[%s3189_s4 + $0x8] sm:$0xff]  ;;  %v370_v44 = vld [vmem:[%s3189_s4] sm:$0xff] }
  0x4f   :  { %v2426_v10 = vsel %vm244_vm1, %v1854_v5, %v243_v9  ;;  %393 = vmatpush.msra.mxu2 %v374_v32 }
  0x50   :  { %324 = vmatpush.msra.mxu0 %v297_v33  ;;  %359 = vmatpush.msra.mxu1 %v338_v34 }
  0x51   :  { %394 = vmatpush.msra.mxu2 %v373_v35 }
  0x52   :  { %325 = vmatpush.msra.mxu0 %v296_v36  ;;  %360 = vmatpush.msra.mxu1 %v337_v37 }
  0x53   :  { %395 = vmatpush.msra.mxu2 %v372_v38 }
  0x54   :  { %326 = vmatpush.msra.mxu0 %v295_v39  ;;  %361 = vmatpush.msra.mxu1 %v336_v40 }
  0x55   :  { %396 = vmatpush.msra.mxu2 %v371_v41 }
  0x56   :  { %327 = vmatpush.msra.mxu0 %v294_v42  ;;  %362 = vmatpush.msra.mxu1 %v335_v43 }
  0x57   :  { %397 = vmatpush.msra.mxu2 %v370_v44 }
  0xb4   :  { %v235_v11 = vpop.xlane.xlu0 %234 }
  0xb5   :  { %v246_v12 = vmul.f32 %v2426_v10, %v235_v11 }
  0xb7   :  { %v2430_v13 = vsub.f32 %v2418_v0, %v246_v12  ;;  %v1836_v12 = vld [vmem:[#allocation10] ss:$0 sm:$0xff] }
  0xb9   :  { %v250_v14 = vmul.f32 %v2430_v13, %v2430_v13 }
  0xbb   :  { %v252_v15 = vsel %vm232_vm0, %v250_v14, 0.0 }
  0xbc   :  { %253 = vadd.xlane.f32.xlu1 %v252_v15  ;;  %v238_v16 = vpop.xlane.xlu0 %237 }
  0xbd   :  { %v247_v17 = vmul.f32 %v2426_v10, %v238_v16 }
  0xbf   :  { %v2437_v18 = vsub.f32 %v2420_v1, %v247_v17 }
  0xc1   :  { %v251_v19 = vmul.f32 %v2437_v18, %v2437_v18 }
  0xc3   :  { %v255_v20 = vsel %vm232_vm0, %v251_v19, 0.0  ;;  %v1837_v19 = vld [vmem:[#allocation11] ss:$0 sm:$0xff] }
  0xc4   :  { %256 = vadd.xlane.f32.xlu1 %v255_v20 }
 0x12f   :  { %v254_v45 = vpop.xlane.xlu1 %253 }
 0x130   :  { %v258_v46 = vmul.f32 %v254_v45, %v2426_v10 }
 0x132   :  { %v260_v47 = vadd.f32 1e-05, %v258_v46  ;;  %v537_v46 = vld [vmem:[%s3155_s9 + $0x38] sm:$0xff] }
 0x133   :  { %556 = vmatpush.msrb.mxu0 %v537_v46 }
 0x134   :  { %1855 = vrsqrt.f32 %v260_v47  ;;  %vm268_vm3 = vweird.f32 %v260_v47 }
 0x137   :  { %v257_v48 = vpop.xlane.xlu1 %256 }
 0x138   :  { %v259_v49 = vmul.f32 %v257_v48, %v2426_v10  ;;  %v535_v48 = vld [vmem:[%s3155_s9 + $0x28] sm:$0xff] }
 0x13a   :  { %v1856_v50 = vpop.eup %1855  ;;  %v261_v51 = vadd.f32 1e-05, %v259_v49  ;;  %v534_v49 = vld [vmem:[%s3155_s9 + $0x20] sm:$0xff] }
 0x13b   :  { %v263_v52 = vmul.f32 %v1856_v50, %v260_v47  ;;  %vm269_vm2 = vweird.f32 %v1856_v50  ;;  %v536_v47 = vld [vmem:[%s3155_s9 + $0x30] sm:$0xff] }
 0x13c   :  { %1857 = vrsqrt.f32 %v261_v51  ;;  %vm270_vm4 = vmor %vm268_vm3, %vm269_vm2  ;;  %vm278_vm6 = vweird.f32 %v261_v51  ;;  %557 = vmatpush.msrb.mxu0 %v536_v47 }
 0x13d   :  { %v264_v53 = vmul.f32 %v1856_v50, %v263_v52  ;;  %v531_v52 = vld [vmem:[%s3155_s9 + $0x8] sm:$0xff] }
 0x13e   :  { %558 = vmatpush.msrb.mxu0 %v535_v48 }
 0x13f   :  { %v265_v54 = vmul.f32 0.5, %v264_v53 }
 0x140   :  { %559 = vmatpush.msrb.mxu0 %v534_v49  ;;  %v1839_v49 = vld [vmem:[#allocation14] ss:$0 sm:$0xff] }
 0x141   :  { %v266_v55 = vsub.f32 1.5, %v265_v54 }
 0x142   :  { %v1858_v56 = vpop.eup %1857 }
 0x143   :  { %v267_v57 = vmul.f32 %v1856_v50, %v266_v55  ;;  %v273_v58 = vmul.f32 %v1858_v56, %v261_v51  ;;  %vm279_vm5 = vweird.f32 %v1858_v56  ;;  %v532_v51 = vld [vmem:[%s3155_s9 + $0x10] sm:$0xff] }
 0x144   :  { %vm280_vm7 = vmor %vm278_vm6, %vm279_vm5 }
 0x145   :  { %v271_v60 = vsel %vm270_vm4, %v1856_v50, %v267_v57  ;;  %v274_v61 = vmul.f32 %v1858_v56, %v273_v58  ;;  %v533_v50 = vld [vmem:[%s3155_s9 + $0x18] sm:$0xff] }
 0x146   :  { %v282_v62 = vmul.f32 %v271_v60, %v2430_v13  ;;  %v1835_v13 = vld [vmem:[#allocation8] ss:$0 sm:$0xff]  ;;  %560 = vmatpush.msrb.mxu0 %v533_v50 }
 0x147   :  { %v275_v2 = vmul.f32 0.5, %v274_v61 }
 0x148   :  { %v287_v3 = vmul.f32 %v1833_v59, %v282_v62  ;;  %561 = vmatpush.msrb.mxu0 %v532_v51  ;;  %v1838_v62 = vld [vmem:[%s3156_s10] ss:$0 sm:$0xff] }
 0x149   :  { %v276_v4 = vsub.f32 1.5, %v275_v2 }
 0x14a   :  { %v292_v5 = vadd.f32 %v1834_v63, %v287_v3  ;;  %562 = vmatpush.msrb.mxu0 %v531_v52 }
 0x14b   :  { %v277_v6 = vmul.f32 %v1858_v56, %v276_v4 }
 0x14c   :  { %1684 = vmatmul.msk.f32.vlgmr.msra.gmra.mxu0 %vm232_vm0, %v292_v5  ;;  %1686 = vmatmul.msk.f32.vlgmr.msra.gmra.mxu1 %vm232_vm0, %v292_v5 }
 0x14d   :  { %v281_v7 = vsel %vm280_vm7, %v1858_v56, %v277_v6  ;;  %1688 = vmatmul.msk.f32.vlgmr.msra.gmra.mxu2 %vm232_vm0, %v292_v5 }
 0x14e   :  { %v283_v8 = vmul.f32 %v281_v7, %v2437_v18 }
 0x150   :  { %v288_v9 = vmul.f32 %v1833_v59, %v283_v8  ;;  %v530_v59 = vld [vmem:[%s3155_s9] sm:$0xff] }
 0x151   :  { %563 = vmatpush.msrb.mxu0 %v530_v59 }
 0x152   :  { %v293_v11 = vadd.f32 %v1834_v63, %v288_v9 }
 0x154   :  { %1685 = vmatmul.msk.f32.gmra.mxu0 %vm232_vm0, %v293_v11  ;;  %1687 = vmatmul.msk.f32.gmra.mxu1 %vm232_vm0, %v293_v11 }
 0x155   :  { %1689 = vmatmul.msk.f32.gmra.mxu2 %vm232_vm0, %v293_v11 }
 0x1c9   :  { %v329_v14 = vpop.f32.mrf.mxu0  ;;  %v364_v15 = vpop.f32.mrf.mxu1 }
 0x1ca   :  { %v365_v16 = vadd.f32 %v1836_v12, %v364_v15  ;;  %v330_v17 = vadd.f32 %v1835_v13, %v329_v14 }
 0x1cc   :  { %1690 = vmatpush.xpose.msk.msra.mxu3 %vm232_vm0, %v365_v16 }
 0x1cf   :  { %1691 = vmatmul.msk.f32.vlgmr.msra.gmra.mxu3 %vm232_vm0, %v330_v17 }
 0x1d0   :  { %v399_v18 = vpop.f32.mrf.mxu2 }
 0x1d1   :  { %v367_v20 = vpop.f32.mrf.mxu1  ;;  %v332_v21 = vpop.f32.mrf.mxu0  ;;  %v400_v23 = vadd.f32 %v1837_v19, %v399_v18  ;;  %v644_v18 = vld [vmem:[%s3161_s15 + $0x78] sm:$0xff] }
 0x1d2   :  { %v368_v22 = vadd.f32 %v1836_v12, %v367_v20  ;;  %v333_v24 = vadd.f32 %v1835_v13, %v332_v21  ;;  %688 = vmatpush.msrb.mxu2 %v644_v18  ;;  %v641_v20 = vld [vmem:[%s3161_s15 + $0x60] sm:$0xff]  ;;  %v642_v21 = vld [vmem:[%s3161_s15 + $0x68] sm:$0xff] }
 0x1d3   :  { %v792_v18 = vld [vmem:[%s3163_s17 + $0x28] sm:$0xff] }
 0x1d4   :  { %1692 = vmatpush.xpose.msk.msrb.mxu3 %vm232_vm0, %v368_v22  ;;  %689 = vmatpush.msrb.mxu2 %v642_v21  ;;  %v639_v22 = vld [vmem:[%s3161_s15 + $0x50] sm:$0xff]  ;;  %v645_v21 = vld [vmem:[%s3162_s16] sm:$0x3] }
 0x1d7   :  { %1693 = vmatmul.msk.f32.vlgmr.msrb.gmra.mxu3 %vm232_vm0, %v333_v24  ;;  %v637_v24 = vld [vmem:[%s3161_s15 + $0x40] sm:$0xff] }
 0x1d8   :  { %502 = vmatpush.msra.mxu3 %v400_v23  ;;  %v402_v25 = vpop.f32.mrf.mxu2  ;;  %v640_v23 = vld [vmem:[%s3161_s15 + $0x58] sm:$0xff] }
 0x1d9   :  { %v403_v26 = vadd.f32 %v1837_v19, %v402_v25  ;;  %v643_v19 = vld [vmem:[%s3161_s15 + $0x70] sm:$0xff]  ;;  %690 = vmatpush.msrb.mxu2 %v640_v23  ;;  %v638_v25 = vld [vmem:[%s3161_s15 + $0x48] sm:$0xff]  ;;  %v810_v23 = vld [vmem:[%s3163_s17 + $0xb8] sm:$0xff] }
 0x1da   :  { %665 = vmatpush.msrb.mxu1 %v643_v19  ;;  %v812_v19 = vld [vmem:[%s3163_s17 + $0xc8] sm:$0xff] }
 0x1db   :  { %525 = vmatpush.msrb.mxu3 %v403_v26  ;;  %691 = vmatpush.msrb.mxu2 %v638_v25  ;;  %v635_v26 = vld [vmem:[%s3161_s15 + $0x30] sm:$0xff] }
 0x1dc   :  { %666 = vmatpush.msrb.mxu1 %v641_v20  ;;  %v811_v20 = vld [vmem:[%s3163_s17 + $0xc0] sm:$0xff]  ;;  %v809_v25 = vld [vmem:[%s3163_s17 + $0xb0] sm:$0xff] }
 0x1de   :  { %667 = vmatpush.msrb.mxu1 %v639_v22  ;;  %v791_v22 = vld [vmem:[%s3163_s17 + $0x20] sm:$0xff] }
 0x1e0   :  { %668 = vmatpush.msrb.mxu1 %v637_v24  ;;  %v790_v24 = vld [vmem:[%s3163_s17 + $0x18] sm:$0xff] }
 0x1e2   :  { %669 = vmatpush.msrb.mxu1 %v635_v26  ;;  %v647_v26 = vperm.slane %v645_v21, 0 }
 0x252   :  { %v428_v27 = vpop.f32.mrf.mxu3 }
 0x253   :  { %v457_v29 = vmul.f32 0.125, %v428_v27  ;;  %v636_v27 = vld [vmem:[%s3161_s15 + $0x38] sm:$0xff] }
 0x254   :  { %692 = vmatpush.msrb.mxu2 %v636_v27  ;;  %v789_v27 = vld [vmem:[%s3163_s17 + $0x10] sm:$0xff] }
 0x255   :  { %v459_v30 = vadd.f32 %v457_v29, %v2531_v28  ;;  %v633_v29 = vld [vmem:[%s3161_s15 + $0x20] sm:$0xff] }
 0x256   :  { %670 = vmatpush.msrb.mxu1 %v633_v29  ;;  %v808_v29 = vld [vmem:[%s3163_s17 + $0xa8] sm:$0xff] }
 0x257   :  { %v462_v31 = vsel %vm461_vm8, %v459_v30, -inf }
 0x258   :  { %463 = vmax.xlane.f32.xlu2 %v462_v31  ;;  %v631_v31 = vld [vmem:[%s3161_s15 + $0x10] sm:$0xff] }
 0x259   :  { %671 = vmatpush.msrb.mxu1 %v631_v31  ;;  %v788_v31 = vld [vmem:[%s3163_s17 + $0x8] sm:$0xff] }
 0x25a   :  { %v454_v32 = vpop.f32.mrf.mxu3 }
 0x25b   :  { %v458_v33 = vmul.f32 0.125, %v454_v32  ;;  %v632_v32 = vld [vmem:[%s3161_s15 + $0x18] sm:$0xff] }
 0x25d   :  { %v460_v34 = vadd.f32 %v458_v33, %v2531_v28  ;;  %v629_v33 = vld [vmem:[%s3161_s15] sm:$0xff] }
 0x25e   :  { %672 = vmatpush.msrb.mxu1 %v629_v33 }
 0x25f   :  { %v465_v35 = vsel %vm461_vm8, %v460_v34, -inf }
 0x260   :  { %466 = vmax.xlane.f32.xlu2 %v465_v35 }
 0x2cb   :  { %v464_v36 = vpop.xlane.xlu2 %463 }
 0x2cc   :  { %v468_v37 = vsub.f32 %v459_v30, %v464_v36  ;;  %v634_v30 = vld [vmem:[%s3161_s15 + $0x28] sm:$0xff] }
 0x2cd   :  { %693 = vmatpush.msrb.mxu2 %v634_v30 }
 0x2ce   :  { %v470_v38 = vmul.f32 1.442695, %v468_v37 }
 0x2cf   :  { %694 = vmatpush.msrb.mxu2 %v632_v32  ;;  %v807_v32 = vld [vmem:[%s3163_s17 + $0xa0] sm:$0xff] }
 0x2d0   :  { %1859 = vpow2.f32 %v470_v38 }
 0x2d3   :  { %v467_v39 = vpop.xlane.xlu2 %466 }
 0x2d4   :  { %v469_v40 = vsub.f32 %v460_v34, %v467_v39  ;;  %v630_v34 = vld [vmem:[%s3161_s15 + $0x8] sm:$0xff] }
 0x2d5   :  { %695 = vmatpush.msrb.mxu2 %v630_v34  ;;  %v787_v34 = vld [vmem:[%s3163_s17] sm:$0xff] }
 0x2d6   :  { %v1860_v41 = vpop.eup %1859  ;;  %v472_v42 = vmul.f32 1.442695, %v469_v40 }
 0x2d7   :  { %v474_v43 = vsel %vm461_vm8, %v1860_v41, 0.0 }
 0x2d8   :  { %1861 = vpow2.f32 %v472_v42  ;;  %475 = vadd.xlane.f32.xlu0 %v474_v43 }
 0x2de   :  { %v1862_v44 = vpop.eup %1861 }
 0x2df   :  { %v477_v45 = vsel %vm461_vm8, %v1862_v44, 0.0 }
 0x2e0   :  { %478 = vadd.xlane.f32.xlu1 %v477_v45 }
 0x34b   :  { %v476_v53 = vpop.xlane.xlu0 %475 }
 0x34c   :  { %1863 = vrcp.f32 %v476_v53  ;;  %v1840_v53 = vld [vmem:[#allocation16] ss:$0 sm:$0xff] }
 0x352   :  { %v1864_v54 = vpop.eup %1863 }
 0x353   :  { %v482_v55 = vmul.f32 %v1864_v54, %v1860_v41  ;;  %v479_v56 = vpop.xlane.xlu1 %478 }
 0x354   :  { %1865 = vrcp.f32 %v479_v56 }
 0x355   :  { %1694 = vmatmul.msk.f32.vlgmr.msra.gmra.mxu3 %vm461_vm8, %v482_v55 }
 0x35a   :  { %v1866_v57 = vpop.eup %1865 }
 0x35b   :  { %v483_v58 = vmul.f32 %v1866_v57, %v1862_v44 }
 0x35d   :  { %1695 = vmatmul.msk.f32.vlgmr.msrb.gmra.mxu3 %vm461_vm8, %v483_v58 }
 0x3d8   :  { %v504_v60 = vpop.f32.mrf.mxu3 }
 0x3d9   :  { %1696 = vmatmul.msk.f32.vlgmr.msrb.gmra.mxu0 %vm232_vm0, %v504_v60 }
 0x3e0   :  { %v527_v61 = vpop.f32.mrf.mxu3 }
 0x3e1   :  { %1697 = vmatmul.msk.f32.gmra.mxu0 %vm232_vm0, %v527_v61 }
 0x456   :  { %v565_v63 = vpop.f32.mrf.mxu0 }
 0x457   :  { %v566_v2 = vadd.f32 %v1838_v62, %v565_v63  ;;  %v802_v63 = vld [vmem:[%s3163_s17 + $0x78] sm:$0xff] }
 0x458   :  { %823 = vmatpush.msra.mxu3 %v802_v63 }
 0x459   :  { %v2571_v3 = vadd.f32 %v566_v2, %v2418_v0  ;;  %v801_v2 = vld [vmem:[%s3163_s17 + $0x70] sm:$0xff] }
 0x45a   :  { %824 = vmatpush.msra.mxu3 %v801_v2 }
 0x45b   :  { %v575_v4 = vsel %vm232_vm0, %v2571_v3, 0.0 }
 0x45c   :  { %576 = vadd.xlane.f32.xlu2 %v575_v4  ;;  %v800_v4 = vld [vmem:[%s3163_s17 + $0x68] sm:$0xff] }
 0x45d   :  { %825 = vmatpush.msra.mxu3 %v800_v4 }
 0x45e   :  { %v568_v5 = vpop.f32.mrf.mxu0 }
 0x45f   :  { %v569_v6 = vadd.f32 %v1838_v62, %v568_v5  ;;  %v799_v5 = vld [vmem:[%s3163_s17 + $0x60] sm:$0xff] }
 0x460   :  { %826 = vmatpush.msra.mxu3 %v799_v5 }
 0x461   :  { %v2576_v7 = vadd.f32 %v569_v6, %v2420_v1  ;;  %v818_v6 = vld [vmem:[%s3163_s17 + $0xf8] sm:$0xff] }
 0x462   :  { %846 = vmatpush.msra.mxu0 %v818_v6 }
 0x463   :  { %v578_v8 = vsel %vm232_vm0, %v2576_v7, 0.0 }
 0x464   :  { %579 = vadd.xlane.f32.xlu0 %v578_v8  ;;  %v798_v8 = vld [vmem:[%s3163_s17 + $0x58] sm:$0xff] }
 0x465   :  { %827 = vmatpush.msra.mxu3 %v798_v8 }
 0x4cf   :  { %v577_v9 = vpop.xlane.xlu2 %576 }
 0x4d0   :  { %v581_v11 = vmul.f32 %v577_v9, %v2426_v10  ;;  %v817_v9 = vld [vmem:[%s3163_s17 + $0xf0] sm:$0xff] }
 0x4d1   :  { %847 = vmatpush.msra.mxu0 %v817_v9 }
 0x4d2   :  { %v2582_v12 = vsub.f32 %v2571_v3, %v581_v11  ;;  %v797_v11 = vld [vmem:[%s3163_s17 + $0x50] sm:$0xff] }
 0x4d3   :  { %828 = vmatpush.msra.mxu3 %v797_v11 }
 0x4d4   :  { %v585_v0 = vmul.f32 %v2582_v12, %v2582_v12 }
 0x4d6   :  { %v587_v13 = vsel %vm232_vm0, %v585_v0, 0.0  ;;  %v796_v0 = vld [vmem:[%s3163_s17 + $0x48] sm:$0xff] }
 0x4d7   :  { %588 = vadd.xlane.f32.xlu1 %v587_v13  ;;  %v580_v14 = vpop.xlane.xlu0 %579  ;;  %v815_v13 = vld [vmem:[%s3163_s17 + $0xe0] sm:$0xff]  ;;  %829 = vmatpush.msra.mxu3 %v796_v0 }
 0x4d8   :  { %v582_v1 = vmul.f32 %v580_v14, %v2426_v10  ;;  %v795_v14 = vld [vmem:[%s3163_s17 + $0x40] sm:$0xff] }
 0x4d9   :  { %830 = vmatpush.msra.mxu3 %v795_v14 }
 0x4da   :  { %v2589_v15 = vsub.f32 %v2576_v7, %v582_v1  ;;  %v814_v1 = vld [vmem:[%s3163_s17 + $0xd8] sm:$0xff] }
 0x4dc   :  { %v586_v16 = vmul.f32 %v2589_v15, %v2589_v15 }
 0x4de   :  { %v590_v17 = vsel %vm232_vm0, %v586_v16, 0.0  ;;  %v813_v16 = vld [vmem:[%s3163_s17 + $0xd0] sm:$0xff] }
 0x4df   :  { %591 = vadd.xlane.f32.xlu2 %v590_v17  ;;  %v793_v17 = vld [vmem:[%s3163_s17 + $0x30] sm:$0xff] }
 0x54a   :  { %v589_v35 = vpop.xlane.xlu1 %588 }
 0x54b   :  { %v593_v36 = vmul.f32 %v589_v35, %v2426_v10  ;;  %v806_v35 = vld [vmem:[%s3163_s17 + $0x98] sm:$0xff] }
 0x54d   :  { %v595_v37 = vadd.f32 1e-05, %v593_v36 }
 0x54f   :  { %1867 = vrsqrt.f32 %v595_v37  ;;  %vm603_vm10 = vweird.f32 %v595_v37 }
 0x552   :  { %v592_v38 = vpop.xlane.xlu2 %591 }
 0x553   :  { %v594_v39 = vmul.f32 %v592_v38, %v2426_v10  ;;  %v805_v38 = vld [vmem:[%s3163_s17 + $0x90] sm:$0xff] }
 0x555   :  { %v1868_v40 = vpop.eup %1867  ;;  %v596_v41 = vadd.f32 1e-05, %v594_v39 }
 0x556   :  { %v598_v42 = vmul.f32 %v1868_v40, %v595_v37  ;;  %vm604_vm9 = vweird.f32 %v1868_v40  ;;  %v648_v37 = vperm.slane %v645_v21, 1 }
 0x557   :  { %1869 = vrsqrt.f32 %v596_v41  ;;  %vm605_vm11 = vmor %vm603_vm10, %vm604_vm9  ;;  %vm613_vm13 = vweird.f32 %v596_v41 }
 0x558   :  { %v599_v43 = vmul.f32 %v1868_v40, %v598_v42 }
 0x55a   :  { %v600_v44 = vmul.f32 0.5, %v599_v43  ;;  %v803_v43 = vld [vmem:[%s3163_s17 + $0x80] sm:$0xff] }
 0x55c   :  { %v601_v45 = vsub.f32 1.5, %v600_v44 }
 0x55d   :  { %v1870_v46 = vpop.eup %1869 }
 0x55e   :  { %v602_v47 = vmul.f32 %v1868_v40, %v601_v45  ;;  %v608_v48 = vmul.f32 %v1870_v46, %v596_v41  ;;  %vm614_vm12 = vweird.f32 %v1870_v46  ;;  %v804_v41 = vld [vmem:[%s3163_s17 + $0x88] sm:$0xff] }
 0x55f   :  { %vm615_vm14 = vmor %vm613_vm13, %vm614_vm12 }
 0x560   :  { %v606_v50 = vsel %vm605_vm11, %v1868_v40, %v602_v47  ;;  %v609_v51 = vmul.f32 %v1870_v46, %v608_v48 }
 0x561   :  { %v617_v52 = vmul.f32 %v606_v50, %v2582_v12  ;;  %v816_v12 = vld [vmem:[%s3163_s17 + $0xe8] sm:$0xff] }
 0x562   :  { %v610_v54 = vmul.f32 0.5, %v609_v51  ;;  %848 = vmatpush.msra.mxu0 %v816_v12 }
 0x563   :  { %v622_v55 = vmul.f32 %v1839_v49, %v617_v52 }
 0x564   :  { %v611_v56 = vsub.f32 1.5, %v610_v54  ;;  %849 = vmatpush.msra.mxu0 %v815_v13 }
 0x565   :  { %v627_v57 = vadd.f32 %v1840_v53, %v622_v55 }
 0x566   :  { %v612_v58 = vmul.f32 %v1870_v46, %v611_v56  ;;  %850 = vmatpush.msra.mxu0 %v814_v1 }
 0x567   :  { %1698 = vmatmul.msk.f32.vlgmr.msrb.gmra.mxu1 %vm232_vm0, %v627_v57  ;;  %1700 = vmatmul.msk.f32.vlgmr.msrb.gmra.mxu2 %vm232_vm0, %v627_v57 }
 0x568   :  { %v616_v59 = vsel %vm615_vm14, %v1870_v46, %v612_v58  ;;  %851 = vmatpush.msra.mxu0 %v813_v16 }
 0x569   :  { %v618_v60 = vmul.f32 %v616_v59, %v2589_v15  ;;  %v794_v15 = vld [vmem:[%s3163_s17 + $0x38] sm:$0xff] }
 0x56a   :  { %831 = vmatpush.msra.mxu3 %v794_v15  ;;  %852 = vmatpush.msra.mxu0 %v812_v19 }
 0x56b   :  { %v623_v61 = vmul.f32 %v1839_v49, %v618_v60 }
 0x56c   :  { %832 = vmatpush.msra.mxu3 %v793_v17  ;;  %853 = vmatpush.msra.mxu0 %v811_v20 }
 0x56d   :  { %v628_v62 = vadd.f32 %v1840_v53, %v623_v61 }
 0x56e   :  { %833 = vmatpush.msra.mxu3 %v792_v18  ;;  %854 = vmatpush.msra.mxu0 %v810_v23 }
 0x56f   :  { %1699 = vmatmul.msk.f32.gmra.mxu1 %vm232_vm0, %v628_v62  ;;  %1701 = vmatmul.msk.f32.gmra.mxu2 %vm232_vm0, %v628_v62 }
 0x570   :  { %834 = vmatpush.msra.mxu3 %v791_v22  ;;  %855 = vmatpush.msra.mxu0 %v809_v25 }
 0x572   :  { %835 = vmatpush.msra.mxu3 %v790_v24  ;;  %856 = vmatpush.msra.mxu0 %v808_v29 }
 0x574   :  { %836 = vmatpush.msra.mxu3 %v789_v27  ;;  %857 = vmatpush.msra.mxu0 %v807_v32 }
 0x576   :  { %837 = vmatpush.msra.mxu3 %v788_v31  ;;  %858 = vmatpush.msra.mxu0 %v806_v35 }
 0x578   :  { %838 = vmatpush.msra.mxu3 %v787_v34  ;;  %859 = vmatpush.msra.mxu0 %v805_v38 }
 0x57a   :  { %860 = vmatpush.msra.mxu0 %v804_v41 }
 0x57c   :  { %861 = vmatpush.msra.mxu0 %v803_v43 }
 0x5e4   :  { %v674_v30 = vpop.f32.mrf.mxu1 }
 0x5e5   :  { %v2734_v33 = vadd.f32 %v674_v30, %v647_v26 }
 0x5e7   :  { %v1702_v36 = vmul.f32 -1.702, %v2734_v33 }
 0x5e9   :  { %v711_v39 = vmul.f32 1.442695, %v1702_v36 }
 0x5ea   :  { %v697_v40 = vpop.f32.mrf.mxu2 }
 0x5eb   :  { %1871 = vpow2.f32 %v711_v39  ;;  %v2749_v42 = vadd.f32 %v697_v40, %v648_v37 }
 0x5ec   :  { %v677_v44 = vpop.f32.mrf.mxu1 }
 0x5ed   :  { %v1703_v45 = vmul.f32 -1.702, %v2749_v42  ;;  %v2755_v46 = vadd.f32 %v677_v44, %v647_v26 }
 0x5ef   :  { %v713_v47 = vmul.f32 1.442695, %v1703_v45  ;;  %v1704_v48 = vmul.f32 -1.702, %v2755_v46 }
 0x5f1   :  { %v1872_v49 = vpop.eup %1871  ;;  %1873 = vpow2.f32 %v713_v47  ;;  %v715_v50 = vmul.f32 1.442695, %v1704_v48  ;;  %v1841_v47 = vld [vmem:[%s3164_s18] ss:$0 sm:$0xff] }
 0x5f2   :  { %v719_v51 = vadd.f32 1.0, %v1872_v49  ;;  %v700_v52 = vpop.f32.mrf.mxu2 }
 0x5f3   :  { %1875 = vpow2.f32 %v715_v50  ;;  %v2758_v53 = vadd.f32 %v700_v52, %v648_v37 }
 0x5f4   :  { %1877 = vrcp.f32 %v719_v51  ;;  %v734_v63 = vand.u32 2147483648, %v719_v51  ;;  %v732_v5 = vand.u32 2147483647, %v719_v51  ;;  %vm728_vm1 = vweird.f32 %v719_v51 }
 0x5f5   :  { %v1705_v54 = vmul.f32 -1.702, %v2758_v53 }
 0x5f6   :  { %v735_v12 = vor.u32 1.1754944e-38, %v734_v63  ;;  %vm733_vm3 = vcmp.eq.f32.partialorder %v732_v5, 8.507059e+37 }
 0x5f7   :  { %v1874_v55 = vpop.eup %1873  ;;  %v717_v56 = vmul.f32 1.442695, %v1705_v54 }
 0x5f8   :  { %v720_v57 = vadd.f32 1.0, %v1874_v55 }
 0x5f9   :  { %v1876_v58 = vpop.eup %1875  ;;  %1879 = vpow2.f32 %v717_v56 }
 0x5fa   :  { %v1878_v59 = vpop.eup %1877  ;;  %1881 = vrcp.f32 %v720_v57  ;;  %v721_v61 = vadd.f32 1.0, %v1876_v58  ;;  %v749_v15 = vand.u32 2147483648, %v720_v57  ;;  %v747_v18 = vand.u32 2147483647, %v720_v57 }
 0x5fb   :  { %v724_v60 = vmul.f32 %v1878_v59, %v719_v51  ;;  %vm729_vm15 = vweird.f32 %v1878_v59  ;;  %vm743_vm5 = vweird.f32 %v720_v57 }
 0x5fc   :  { %1883 = vrcp.f32 %v721_v61  ;;  %vm730_vm2 = vmor %vm728_vm1, %vm729_vm15  ;;  %v764_v22 = vand.u32 2147483648, %v721_v61  ;;  %v750_v24 = vor.u32 1.1754944e-38, %v749_v15  ;;  %v762_v26 = vand.u32 2147483647, %v721_v61  ;;  %v1720_v15 = vld [vmem:[%s3188_s24 + $0x58] sm:$0xff] }
 0x5fd   :  { %v725_v62 = vsub.f32 1.0, %v724_v60  ;;  %vm748_vm9 = vcmp.eq.f32.partialorder %v747_v18, 8.507059e+37  ;;  %vm758_vm10 = vweird.f32 %v721_v61  ;;  %v1718_v18 = vld [vmem:[%s3188_s24 + $0x48] sm:$0xff] }
 0x5fe   :  { %vm763_vm12 = vcmp.eq.f32.partialorder %v762_v26, 8.507059e+37  ;;  %v1732_v26 = vld [vmem:[%s3189_s4 + $0x68] sm:$0xff] }
 0x5ff   :  { %v1880_v2 = vpop.eup %1879  ;;  %v726_v4 = vmul.f32 %v1878_v59, %v725_v62 }
 0x600   :  { %v1882_v6 = vpop.eup %1881  ;;  %v722_v8 = vadd.f32 1.0, %v1880_v2 }
 0x601   :  { %v727_v9 = vadd.f32 %v1878_v59, %v726_v4  ;;  %v739_v11 = vmul.f32 %v1882_v6, %v720_v57  ;;  %vm744_vm4 = vweird.f32 %v1882_v6 }
 0x602   :  { %1885 = vrcp.f32 %v722_v8  ;;  %v1884_v0 = vpop.eup %1883  ;;  %vm745_vm6 = vmor %vm743_vm5, %vm744_vm4  ;;  %v779_v36 = vand.u32 2147483648, %v722_v8  ;;  %v777_v39 = vand.u32 2147483647, %v722_v8  ;;  %vm773_vm14 = vweird.f32 %v722_v8 }
 0x603   :  { %v731_v13 = vsel %vm730_vm2, %v1878_v59, %v727_v9  ;;  %v740_v14 = vsub.f32 1.0, %v739_v11  ;;  %v754_v16 = vmul.f32 %v1884_v0, %v721_v61  ;;  %vm759_vm7 = vweird.f32 %v1884_v0  ;;  %v1713_v9 = vld [vmem:[%s3187_s3 + $0x70] sm:$0xff] }
 0x604   :  { %v736_v1 = vsel %vm733_vm3, %v735_v12, %v731_v13  ;;  %vm760_vm11 = vmor %vm758_vm10, %vm759_vm7  ;;  %v780_v43 = vor.u32 1.1754944e-38, %v779_v36  ;;  %vm778_vm1 = vcmp.eq.f32.partialorder %v777_v39, 8.507059e+37  ;;  %v1723_v11 = vld [vmem:[%s3188_s24 + $0x70] sm:$0xff]  ;;  %v1712_v12 = vld [vmem:[%s3187_s3 + $0x68] sm:$0xff] }
 0x605   :  { %v783_v17 = vmul.f32 %v736_v1, %v2734_v33  ;;  %v741_v19 = vmul.f32 %v1882_v6, %v740_v14  ;;  %v755_v20 = vsub.f32 1.0, %v754_v16  ;;  %v765_v33 = vor.u32 1.1754944e-38, %v764_v22  ;;  %v1711_v13 = vld [vmem:[%s3187_s3 + $0x60] sm:$0xff]  ;;  %v1710_v1 = vld [vmem:[%s3187_s3 + $0x58] sm:$0xff]  ;;  %v1709_v16 = vld [vmem:[%s3187_s3 + $0x50] sm:$0xff] }
 0x606   :  { %v1721_v14 = vld [vmem:[%s3188_s24 + $0x60] sm:$0xff]  ;;  %v1734_v22 = vld [vmem:[%s3189_s4 + $0x78] sm:$0xff] }
 0x607   :  { %v742_v21 = vadd.f32 %v1882_v6, %v741_v19  ;;  %839 = vmatmul.f32.vlgmr.msra.gmra.mxu3 %v783_v17  ;;  %v756_v25 = vmul.f32 %v1884_v0, %v755_v20  ;;  %v1719_v17 = vld [vmem:[%s3188_s24 + $0x50] sm:$0xff]  ;;  %v1708_v19 = vld [vmem:[%s3187_s3 + $0x48] sm:$0xff]  ;;  %v1707_v20 = vld [vmem:[%s3187_s3 + $0x40] sm:$0xff] }
 0x608   :  { %v1886_v23 = vpop.eup %1885  ;;  %v1727_v36 = vld [vmem:[%s3189_s4 + $0x40] sm:$0xff] }
 0x609   :  { %v746_v27 = vsel %vm745_vm6, %v1882_v6, %v742_v21  ;;  %v769_v29 = vmul.f32 %v1886_v23, %v722_v8  ;;  %v757_v31 = vadd.f32 %v1884_v0, %v756_v25  ;;  %vm774_vm13 = vweird.f32 %v1886_v23  ;;  %v1714_v6 = vld [vmem:[%s3187_s3 + $0x78] sm:$0xff]  ;;  %v1717_v21 = vld [vmem:[%s3188_s24 + $0x40] sm:$0xff]  ;;  %s1648_s3 = sshll.u32 %s2242_s28, 4  ;;  %s1649_s3 = int_to_ptr.vmem [resolvable:$true] %s1648_s3 }
 0x60a   :  { %v751_v30 = vsel %vm748_vm9, %v750_v24, %v746_v27  ;;  %vm775_vm15 = vmor %vm773_vm14, %vm774_vm13  ;;  %v1724_v8 = vld [vmem:[%s3188_s24 + $0x78] sm:$0xff]  ;;  %957 = vmatpush.msra.mxu1 %v1714_v6 }
 0x60b   :  { %v784_v32 = vmul.f32 %v751_v30, %v2749_v42  ;;  %v770_v34 = vsub.f32 1.0, %v769_v29  ;;  %v761_v35 = vsel %vm760_vm11, %v1884_v0, %v757_v31  ;;  %994 = vmatpush.msra.mxu2 %v1724_v8  ;;  %v1722_v0 = vld [vmem:[%s3188_s24 + $0x68] sm:$0xff]  ;;  %v1731_v29 = vld [vmem:[%s3189_s4 + $0x60] sm:$0xff]  ;;  %v1730_v30 = vld [vmem:[%s3189_s4 + $0x58] sm:$0xff] }
 0x60c   :  { %v766_v37 = vsel %vm763_vm12, %v765_v33, %v761_v35  ;;  %958 = vmatpush.msra.mxu1 %v1713_v9  ;;  %v1729_v31 = vld [vmem:[%s3189_s4 + $0x50] sm:$0xff]  ;;  %v1728_v33 = vld [vmem:[%s3189_s4 + $0x48] sm:$0xff] }
 0x60d   :  { %862 = vmatmul.f32.vlgmr.msra.gmra.mxu0 %v784_v32  ;;  %v771_v38 = vmul.f32 %v1886_v23, %v770_v34  ;;  %v785_v40 = vmul.f32 %v766_v37, %v2755_v46  ;;  %995 = vmatpush.msra.mxu2 %v1723_v11 }
 0x60e   :  { %959 = vmatpush.msra.mxu1 %v1712_v12 }
 0x60f   :  { %v772_v41 = vadd.f32 %v1886_v23, %v771_v38  ;;  %842 = vmatmul.f32.gmra.mxu3 %v785_v40  ;;  %996 = vmatpush.msra.mxu2 %v1722_v0 }
 0x610   :  { %960 = vmatpush.msra.mxu1 %v1711_v13 }
 0x611   :  { %v776_v44 = vsel %vm775_vm15, %v1886_v23, %v772_v41  ;;  %997 = vmatpush.msra.mxu2 %v1721_v14  ;;  %v1733_v23 = vld [vmem:[%s3189_s4 + $0x70] sm:$0xff] }
 0x612   :  { %v781_v42 = vsel %vm778_vm1, %v780_v43, %v776_v44  ;;  %961 = vmatpush.msra.mxu1 %v1710_v1 }
 0x613   :  { %v786_v45 = vmul.f32 %v781_v42, %v2758_v53  ;;  %998 = vmatpush.msra.mxu2 %v1720_v15  ;;  %v1842_v42 = vld [vmem:[%s3157_s11 + $0x1] ss:$0 sm:$0xff] }
 0x614   :  { %962 = vmatpush.msra.mxu1 %v1709_v16 }
 0x615   :  { %865 = vmatmul.f32.gmra.mxu0 %v786_v45  ;;  %999 = vmatpush.msra.mxu2 %v1719_v17 }
 0x616   :  { %963 = vmatpush.msra.mxu1 %v1708_v19 }
 0x617   :  { %1000 = vmatpush.msra.mxu2 %v1718_v18 }
 0x618   :  { %964 = vmatpush.msra.mxu1 %v1707_v20 }
 0x619   :  { %1001 = vmatpush.msra.mxu2 %v1717_v21 }
 0x61a   :  { %1031 = vmatpush.msrb.mxu1 %v1734_v22 }
 0x61c   :  { %1032 = vmatpush.msrb.mxu1 %v1733_v23 }
 0x61e   :  { %1033 = vmatpush.msrb.mxu1 %v1732_v26 }
 0x620   :  { %1034 = vmatpush.msrb.mxu1 %v1731_v29 }
 0x622   :  { %1035 = vmatpush.msrb.mxu1 %v1730_v30 }
 0x624   :  { %1036 = vmatpush.msrb.mxu1 %v1729_v31 }
 0x626   :  { %1037 = vmatpush.msrb.mxu1 %v1728_v33  ;;  %v1748_v33 = vld [vmem:[%s3155_s9 + $0x68] sm:$0xff] }
 0x628   :  { %1038 = vmatpush.msrb.mxu1 %v1727_v36  ;;  %v1745_v36 = vld [vmem:[%s3155_s9 + $0x50] sm:$0xff] }
 0x68a   :  { %v840_v48 = vpop.f32.mrf.mxu3  ;;  %v863_v50 = vpop.f32.mrf.mxu0 }
 0x68b   :  { %v841_v49 = vadd.f32 %v1841_v47, %v840_v48 }
 0x68d   :  { %v864_v51 = vadd.f32 %v863_v50, %v841_v49  ;;  %v1843_v50 = vld [vmem:[#allocation13 + $0x1] ss:$0 sm:$0xff] }
 0x68f   :  { %v2769_v46 = vadd.f32 %v864_v51, %v2571_v3 }
 0x691   :  { %v875_v52 = vsel %vm232_vm0, %v2769_v46, 0.0 }
 0x692   :  { %876 = vadd.xlane.f32.xlu0 %v875_v52  ;;  %v843_v54 = vpop.f32.mrf.mxu3  ;;  %v866_v56 = vpop.f32.mrf.mxu0 }
 0x693   :  { %v844_v55 = vadd.f32 %v1841_v47, %v843_v54 }
 0x695   :  { %v867_v53 = vadd.f32 %v866_v56, %v844_v55 }
 0x697   :  { %v2774_v57 = vadd.f32 %v867_v53, %v2576_v7 }
 0x699   :  { %v878_v58 = vsel %vm232_vm0, %v2774_v57, 0.0 }
 0x69a   :  { %879 = vadd.xlane.f32.xlu1 %v878_v58 }
 0x705   :  { %v877_v59 = vpop.xlane.xlu0 %876 }
 0x706   :  { %v881_v60 = vmul.f32 %v877_v59, %v2426_v10 }
 0x708   :  { %v2780_v3 = vsub.f32 %v2769_v46, %v881_v60 }
 0x70a   :  { %v885_v61 = vmul.f32 %v2780_v3, %v2780_v3 }
 0x70c   :  { %v887_v62 = vsel %vm232_vm0, %v885_v61, 0.0  ;;  %v1845_v61 = vld [vmem:[#allocation10 + $0x1] ss:$0 sm:$0xff] }
 0x70d   :  { %888 = vadd.xlane.f32.xlu2 %v887_v62  ;;  %v880_v63 = vpop.xlane.xlu1 %879  ;;  %v1844_v62 = vld [vmem:[#allocation8 + $0x1] ss:$0 sm:$0xff] }
 0x70e   :  { %v882_v7 = vmul.f32 %v880_v63, %v2426_v10 }
 0x710   :  { %v2787_v2 = vsub.f32 %v2774_v57, %v882_v7 }
 0x712   :  { %v886_v4 = vmul.f32 %v2787_v2, %v2787_v2 }
 0x714   :  { %v890_v5 = vsel %vm232_vm0, %v886_v4, 0.0 }
 0x715   :  { %891 = vadd.xlane.f32.xlu0 %v890_v5 }
 0x780   :  { %v889_v24 = vpop.xlane.xlu2 %888 }
 0x781   :  { %v893_v25 = vmul.f32 %v889_v24, %v2426_v10 }
 0x783   :  { %v895_v27 = vadd.f32 1e-05, %v893_v25 }
 0x785   :  { %1887 = vrsqrt.f32 %v895_v27  ;;  %vm903_vm3 = vweird.f32 %v895_v27 }
 0x788   :  { %v892_v32 = vpop.xlane.xlu0 %891 }
 0x789   :  { %v894_v34 = vmul.f32 %v892_v32, %v2426_v10  ;;  %v1749_v32 = vld [vmem:[%s3155_s9 + $0x70] sm:$0xff] }
 0x78b   :  { %v1888_v35 = vpop.eup %1887  ;;  %v896_v38 = vadd.f32 1e-05, %v894_v34  ;;  %v1747_v34 = vld [vmem:[%s3155_s9 + $0x60] sm:$0xff] }
 0x78c   :  { %v898_v37 = vmul.f32 %v1888_v35, %v895_v27  ;;  %vm904_vm2 = vweird.f32 %v1888_v35 }
 0x78d   :  { %1889 = vrsqrt.f32 %v896_v38  ;;  %vm905_vm4 = vmor %vm903_vm3, %vm904_vm2  ;;  %vm913_vm6 = vweird.f32 %v896_v38 }
 0x78e   :  { %v899_v39 = vmul.f32 %v1888_v35, %v898_v37  ;;  %v1744_v37 = vld [vmem:[%s3155_s9 + $0x48] sm:$0xff] }
 0x790   :  { %v900_v40 = vmul.f32 0.5, %v899_v39 }
 0x792   :  { %v901_v41 = vsub.f32 1.5, %v900_v40 }
 0x793   :  { %v1890_v43 = vpop.eup %1889 }
 0x794   :  { %v902_v44 = vmul.f32 %v1888_v35, %v901_v41  ;;  %v908_v45 = vmul.f32 %v1890_v43, %v896_v38  ;;  %vm914_vm5 = vweird.f32 %v1890_v43 }
 0x795   :  { %vm915_vm7 = vmor %vm913_vm6, %vm914_vm5 }
 0x796   :  { %v906_v47 = vsel %vm905_vm4, %v1888_v35, %v902_v44  ;;  %v909_v49 = vmul.f32 %v1890_v43, %v908_v45  ;;  %v1746_v35 = vld [vmem:[%s3155_s9 + $0x58] sm:$0xff] }
 0x797   :  { %v917_v48 = vmul.f32 %v906_v47, %v2780_v3 }
 0x798   :  { %v910_v52 = vmul.f32 0.5, %v909_v49 }
 0x799   :  { %v922_v51 = vmul.f32 %v1842_v42, %v917_v48  ;;  %v1847_v48 = vld [vmem:[%s3156_s10 + $0x1] ss:$0 sm:$0xff] }
 0x79a   :  { %v911_v54 = vsub.f32 1.5, %v910_v52 }
 0x79b   :  { %v927_v55 = vadd.f32 %v1843_v50, %v922_v51 }
 0x79c   :  { %v912_v56 = vmul.f32 %v1890_v43, %v911_v54 }
 0x79d   :  { %1715 = vmatmul.msk.f32.vlgmr.msra.gmra.mxu1 %vm232_vm0, %v927_v55  ;;  %1725 = vmatmul.msk.f32.vlgmr.msra.gmra.mxu2 %vm232_vm0, %v927_v55 }
 0x79e   :  { %v916_v53 = vsel %vm915_vm7, %v1890_v43, %v912_v56 }
 0x79f   :  { %v918_v58 = vmul.f32 %v916_v53, %v2787_v2  ;;  %v1846_v2 = vld [vmem:[#allocation11 + $0x1] ss:$0 sm:$0xff] }
 0x7a1   :  { %v923_v59 = vmul.f32 %v1842_v42, %v918_v58  ;;  %v1743_v42 = vld [vmem:[%s3155_s9 + $0x40] sm:$0xff] }
 0x7a3   :  { %v928_v60 = vadd.f32 %v1843_v50, %v923_v59 }
 0x7a5   :  { %1716 = vmatmul.msk.f32.gmra.mxu1 %vm232_vm0, %v928_v60  ;;  %1726 = vmatmul.msk.f32.gmra.mxu2 %vm232_vm0, %v928_v60 }
 0x7ad   :  { %1735 = vmatmul.msk.f32.vlgmr.msrb.gmra.mxu1 %vm232_vm0, %v927_v55 }
 0x7b5   :  { %1736 = vmatmul.msk.f32.gmra.mxu1 %vm232_vm0, %v928_v60 }
 0x81a   :  { %v966_v3 = vpop.f32.mrf.mxu1 }
 0x81b   :  { %v967_v5 = vadd.f32 %v1844_v62, %v966_v3 }
 0x820   :  { %v1003_v63 = vpop.f32.mrf.mxu2 }
 0x821   :  { %v1004_v7 = vadd.f32 %v1845_v61, %v1003_v63 }
 0x822   :  { %v969_v4 = vpop.f32.mrf.mxu1 }
 0x823   :  { %1737 = vmatpush.xpose.msk.msrb.mxu2 %vm232_vm0, %v1004_v7  ;;  %v970_v12 = vadd.f32 %v1844_v62, %v969_v4  ;;  %v1768_v4 = vld [vmem:[%s3161_s15 + $0xf0] sm:$0xff] }
 0x826   :  { %1738 = vmatmul.msk.f32.vlgmr.msrb.gmra.mxu2 %vm232_vm0, %v967_v5  ;;  %v1769_v5 = vld [vmem:[%s3161_s15 + $0xf8] sm:$0xff] }
 0x828   :  { %v1006_v6 = vpop.f32.mrf.mxu2 }
 0x829   :  { %v1007_v8 = vadd.f32 %v1845_v61, %v1006_v6  ;;  %v1767_v6 = vld [vmem:[%s3161_s15 + $0xe8] sm:$0xff] }
 0x82a   :  { %v1040_v9 = vpop.f32.mrf.mxu1 }
 0x82b   :  { %v1041_v11 = vadd.f32 %v1846_v2, %v1040_v9  ;;  %1739 = vmatpush.xpose.msk.msra.mxu2 %vm232_vm0, %v1007_v8  ;;  %v1764_v8 = vld [vmem:[%s3161_s15 + $0xd0] sm:$0xff]  ;;  %v1765_v9 = vld [vmem:[%s3161_s15 + $0xd8] sm:$0xff] }
 0x82d   :  { %1142 = vmatpush.msrb.mxu3 %v1041_v11  ;;  %v1762_v11 = vld [vmem:[%s3161_s15 + $0xc0] sm:$0xff] }
 0x82e   :  { %1740 = vmatmul.msk.f32.vlgmr.msra.gmra.mxu2 %vm232_vm0, %v970_v12  ;;  %v1763_v12 = vld [vmem:[%s3161_s15 + $0xc8] sm:$0xff] }
 0x82f   :  { %1311 = vmatpush.msrb.mxu2 %v1768_v4  ;;  %v1802_v4 = vld [vmem:[%s3163_s17 + $0x1b8] sm:$0xff] }
 0x832   :  { %v1043_v0 = vpop.f32.mrf.mxu1 }
 0x833   :  { %v1044_v13 = vadd.f32 %v1846_v2, %v1043_v0  ;;  %v1766_v2 = vld [vmem:[%s3161_s15 + $0xe0] sm:$0xff]  ;;  %v1760_v0 = vld [vmem:[%s3161_s15 + $0xb0] sm:$0xff] }
 0x834   :  { %1312 = vmatpush.msrb.mxu2 %v1766_v2  ;;  %v1801_v2 = vld [vmem:[%s3163_s17 + $0x1b0] sm:$0xff] }
 0x835   :  { %1165 = vmatpush.msra.mxu3 %v1044_v13  ;;  %v1761_v13 = vld [vmem:[%s3161_s15 + $0xb8] sm:$0xff] }
 0x836   :  { %1313 = vmatpush.msrb.mxu2 %v1764_v8  ;;  %v1784_v8 = vld [vmem:[%s3163_s17 + $0x128] sm:$0xff] }
 0x838   :  { %1314 = vmatpush.msrb.mxu2 %v1762_v11 }
 0x83a   :  { %1315 = vmatpush.msrb.mxu2 %v1760_v0  ;;  %v1783_v0 = vld [vmem:[%s3163_s17 + $0x120] sm:$0xff] }
 0x8a9   :  { %v1069_v14 = vpop.f32.mrf.mxu2 }
 0x8aa   :  { %v1098_v1 = vmul.f32 0.125, %v1069_v14  ;;  %v1758_v14 = vld [vmem:[%s3161_s15 + $0xa0] sm:$0xff] }
 0x8ab   :  { %1316 = vmatpush.msrb.mxu2 %v1758_v14  ;;  %v1782_v14 = vld [vmem:[%s3163_s17 + $0x118] sm:$0xff] }
 0x8ac   :  { %v1100_v15 = vadd.f32 %v1098_v1, %v2531_v28  ;;  %v1759_v1 = vld [vmem:[%s3161_s15 + $0xa8] sm:$0xff] }
 0x8ae   :  { %v1102_v16 = vsel %vm461_vm8, %v1100_v15, -inf }
 0x8af   :  { %1103 = vmax.xlane.f32.xlu1 %v1102_v16  ;;  %v1757_v16 = vld [vmem:[%s3161_s15 + $0x98] sm:$0xff] }
 0x8b1   :  { %v1095_v17 = vpop.f32.mrf.mxu2 }
 0x8b2   :  { %v1099_v19 = vmul.f32 0.125, %v1095_v17  ;;  %v1754_v17 = vld [vmem:[%s3161_s15 + $0x80] sm:$0xff] }
 0x8b4   :  { %v1101_v18 = vadd.f32 %v1099_v19, %v2531_v28  ;;  %v1750_v28 = vld [vmem:[%s3155_s9 + $0x78] sm:$0xff]  ;;  %v1755_v19 = vld [vmem:[%s3161_s15 + $0x88] sm:$0xff] }
 0x8b5   :  { %1198 = vmatpush.msra.mxu1 %v1750_v28 }
 0x8b6   :  { %v1105_v20 = vsel %vm461_vm8, %v1101_v18, -inf }
 0x8b7   :  { %1106 = vmax.xlane.f32.xlu2 %v1105_v20  ;;  %1199 = vmatpush.msra.mxu1 %v1749_v32  ;;  %v1848_v32 = vld [vmem:[#allocation14 + $0x1] ss:$0 sm:$0xff] }
 0x8b9   :  { %1200 = vmatpush.msra.mxu1 %v1748_v33 }
 0x8bb   :  { %1201 = vmatpush.msra.mxu1 %v1747_v34 }
 0x8bd   :  { %1202 = vmatpush.msra.mxu1 %v1746_v35 }
 0x8bf   :  { %1203 = vmatpush.msra.mxu1 %v1745_v36 }
 0x8c1   :  { %1204 = vmatpush.msra.mxu1 %v1744_v37  ;;  %v1849_v37 = vld [vmem:[#allocation16 + $0x1] ss:$0 sm:$0xff] }
 0x8c3   :  { %1205 = vmatpush.msra.mxu1 %v1743_v42 }
 0x922   :  { %v1104_v21 = vpop.xlane.xlu1 %1103 }
 0x923   :  { %v1108_v22 = vsub.f32 %v1100_v15, %v1104_v21  ;;  %v1756_v15 = vld [vmem:[%s3161_s15 + $0x90] sm:$0xff]  ;;  %s1650_s15 = sshll.u32 %s3168_s22, 4  ;;  %s1651_s15 = int_to_ptr.hbm [resolvable:$true] %s1650_s15 }
 0x924   :  { %1317 = vmatpush.msrb.mxu2 %v1756_v15 }
 0x925   :  { %v1110_v23 = vmul.f32 1.442695, %v1108_v22 }
 0x926   :  { %1318 = vmatpush.msrb.mxu2 %v1754_v17 }
 0x927   :  { %1891 = vpow2.f32 %v1110_v23 }
 0x92a   :  { %v1107_v24 = vpop.xlane.xlu2 %1106 }
 0x92b   :  { %v1109_v25 = vsub.f32 %v1101_v18, %v1107_v24 }
 0x92d   :  { %v1892_v26 = vpop.eup %1891  ;;  %v1112_v27 = vmul.f32 1.442695, %v1109_v25 }
 0x92e   :  { %v1114_v29 = vsel %vm461_vm8, %v1892_v26, 0.0 }
 0x92f   :  { %1115 = vadd.xlane.f32.xlu0 %v1114_v29  ;;  %1893 = vpow2.f32 %v1112_v27 }
 0x935   :  { %v1894_v30 = vpop.eup %1893 }
 0x936   :  { %v1117_v31 = vsel %vm461_vm8, %v1894_v30, 0.0 }
 0x937   :  { %1118 = vadd.xlane.f32.xlu1 %v1117_v31 }
 0x9a2   :  { %v1116_v38 = vpop.xlane.xlu0 %1115 }
 0x9a3   :  { %1895 = vrcp.f32 %v1116_v38 }
 0x9a9   :  { %v1896_v39 = vpop.eup %1895 }
 0x9aa   :  { %v1122_v40 = vmul.f32 %v1896_v39, %v1892_v26  ;;  %v1119_v41 = vpop.xlane.xlu1 %1118 }
 0x9ab   :  { %1897 = vrcp.f32 %v1119_v41 }
 0x9ac   :  { %1741 = vmatmul.msk.f32.vlgmr.msrb.gmra.mxu3 %vm461_vm8, %v1122_v40 }
 0x9ad   :  { %1334 = vmatpush.msrb.mxu3 %v1769_v5  ;;  %v1785_v5 = vld [vmem:[%s3163_s17 + $0x130] sm:$0xff] }
 0x9af   :  { %1335 = vmatpush.msrb.mxu3 %v1767_v6  ;;  %v1770_v6 = vld [vmem:[%s3162_s16 + $0x2] sm:$0x3]  ;;  %s2243_s16 = smov [#allocation20]  }
 0x9b0   :  { %v1293_v11 = vperm.slane %v1770_v6, 0  ;;  %s1662_s24 = sshll.u32 %s2243_s16, 4  ;;  %s1663_s24 = int_to_ptr.vmem [resolvable:$true] %s1662_s24 }
 0x9b1   :  { %v1898_v43 = vpop.eup %1897  ;;  %1336 = vmatpush.msrb.mxu3 %v1765_v9  ;;  %v1800_v9 = vld [vmem:[%s3163_s17 + $0x1a8] sm:$0xff] }
 0x9b2   :  { %v1123_v44 = vmul.f32 %v1898_v43, %v1894_v30 }
 0x9b3   :  { %1337 = vmatpush.msrb.mxu3 %v1763_v12  ;;  %v1294_v12 = vperm.slane %v1770_v6, 1 }
 0x9b4   :  { %1742 = vmatmul.msk.f32.vlgmr.msra.gmra.mxu3 %vm461_vm8, %v1123_v44 }
 0x9b5   :  { %1338 = vmatpush.msrb.mxu3 %v1761_v13  ;;  %v1799_v13 = vld [vmem:[%s3163_s17 + $0x1a0] sm:$0xff] }
 0x9b7   :  { %1339 = vmatpush.msrb.mxu3 %v1759_v1  ;;  %v1798_v1 = vld [vmem:[%s3163_s17 + $0x198] sm:$0xff] }
 0x9b9   :  { %1340 = vmatpush.msrb.mxu3 %v1757_v16 }
 0x9bb   :  { %1341 = vmatpush.msrb.mxu3 %v1755_v19 }
 0xa2f   :  { %v1144_v45 = vpop.f32.mrf.mxu3 }
 0xa30   :  { %1752 = vmatmul.msk.f32.vlgmr.msra.gmra.mxu1 %vm232_vm0, %v1144_v45 }
 0xa37   :  { %v1167_v47 = vpop.f32.mrf.mxu3 }
 0xa38   :  { %1753 = vmatmul.msk.f32.gmra.mxu1 %vm232_vm0, %v1167_v47 }
 0xaad   :  { %v1207_v49 = vpop.f32.mrf.mxu1 }
 0xaae   :  { %v1208_v50 = vadd.f32 %v1847_v48, %v1207_v49  ;;  %v1810_v49 = vld [vmem:[%s3163_s17 + $0x1f8] sm:$0xff] }
 0xaaf   :  { %1494 = vmatpush.msrb.mxu1 %v1810_v49 }
 0xab0   :  { %v2919_v51 = vadd.f32 %v1208_v50, %v2769_v46  ;;  %v1793_v50 = vld [vmem:[%s3163_s17 + $0x170] sm:$0xff] }
 0xab2   :  { %v1219_v52 = vsel %vm232_vm0, %v2919_v51, 0.0 }
 0xab3   :  { %1220 = vadd.xlane.f32.xlu2 %v1219_v52  ;;  %v1809_v52 = vld [vmem:[%s3163_s17 + $0x1f0] sm:$0xff] }
 0xab4   :  { %1495 = vmatpush.msrb.mxu1 %v1809_v52 }
 0xab5   :  { %v1210_v54 = vpop.f32.mrf.mxu1 }
 0xab6   :  { %v1211_v55 = vadd.f32 %v1847_v48, %v1210_v54  ;;  %v1794_v48 = vld [vmem:[%s3163_s17 + $0x178] sm:$0xff]  ;;  %v1792_v54 = vld [vmem:[%s3163_s17 + $0x168] sm:$0xff] }
 0xab7   :  { %1471 = vmatpush.msrb.mxu0 %v1794_v48 }
 0xab8   :  { %v2924_v56 = vadd.f32 %v1211_v55, %v2774_v57  ;;  %v1808_v55 = vld [vmem:[%s3163_s17 + $0x1e8] sm:$0xff] }
 0xab9   :  { %1472 = vmatpush.msrb.mxu0 %v1793_v50  ;;  %1496 = vmatpush.msrb.mxu1 %v1808_v55 }
 0xaba   :  { %v1222_v53 = vsel %vm232_vm0, %v2924_v56, 0.0 }
 0xabb   :  { %1223 = vadd.xlane.f32.xlu0 %v1222_v53  ;;  %1473 = vmatpush.msrb.mxu0 %v1792_v54  ;;  %v1791_v53 = vld [vmem:[%s3163_s17 + $0x160] sm:$0xff] }
 0xabd   :  { %1474 = vmatpush.msrb.mxu0 %v1791_v53 }
 0xb26   :  { %v1221_v58 = vpop.xlane.xlu2 %1220 }
 0xb27   :  { %v1225_v59 = vmul.f32 %v1221_v58, %v2426_v10  ;;  %v1807_v58 = vld [vmem:[%s3163_s17 + $0x1e0] sm:$0xff] }
 0xb28   :  { %1497 = vmatpush.msrb.mxu1 %v1807_v58 }
 0xb29   :  { %v2930_v60 = vsub.f32 %v2919_v51, %v1225_v59  ;;  %v1790_v59 = vld [vmem:[%s3163_s17 + $0x158] sm:$0xff] }
 0xb2a   :  { %1475 = vmatpush.msrb.mxu0 %v1790_v59 }
 0xb2b   :  { %v1229_v46 = vmul.f32 %v2930_v60, %v2930_v60 }
 0xb2d   :  { %v1231_v3 = vsel %vm232_vm0, %v1229_v46, 0.0  ;;  %v1789_v46 = vld [vmem:[%s3163_s17 + $0x150] sm:$0xff] }
 0xb2e   :  { %1232 = vadd.xlane.f32.xlu1 %v1231_v3  ;;  %v1224_v61 = vpop.xlane.xlu0 %1223  ;;  %v1805_v3 = vld [vmem:[%s3163_s17 + $0x1d0] sm:$0xff]  ;;  %1476 = vmatpush.msrb.mxu0 %v1789_v46 }
 0xb2f   :  { %v1226_v57 = vmul.f32 %v1224_v61, %v2426_v10  ;;  %v1788_v61 = vld [vmem:[%s3163_s17 + $0x148] sm:$0xff] }
 0xb30   :  { %1477 = vmatpush.msrb.mxu0 %v1788_v61 }
 0xb31   :  { %v2937_v62 = vsub.f32 %v2924_v56, %v1226_v57  ;;  %v1804_v57 = vld [vmem:[%s3163_s17 + $0x1c8] sm:$0xff] }
 0xb33   :  { %v1230_v63 = vmul.f32 %v2937_v62, %v2937_v62 }
 0xb35   :  { %v1234_v7 = vsel %vm232_vm0, %v1230_v63, 0.0  ;;  %v1803_v63 = vld [vmem:[%s3163_s17 + $0x1c0] sm:$0xff] }
 0xb36   :  { %1235 = vadd.xlane.f32.xlu2 %v1234_v7  ;;  %v1786_v7 = vld [vmem:[%s3163_s17 + $0x138] sm:$0xff] }
 0xba1   :  { %v1233_v18 = vpop.xlane.xlu1 %1232 }
 0xba2   :  { %v1237_v20 = vmul.f32 %v1233_v18, %v2426_v10  ;;  %v1781_v18 = vld [vmem:[%s3163_s17 + $0x110] sm:$0xff] }
 0xba4   :  { %v1239_v21 = vadd.f32 1e-05, %v1237_v20  ;;  %v1797_v20 = vld [vmem:[%s3163_s17 + $0x190] sm:$0xff] }
 0xba6   :  { %1899 = vrsqrt.f32 %v1239_v21  ;;  %vm1247_vm9 = vweird.f32 %v1239_v21 }
 0xba9   :  { %v1236_v22 = vpop.xlane.xlu2 %1235 }
 0xbaa   :  { %v1238_v23 = vmul.f32 %v1236_v22, %v2426_v10  ;;  %v1796_v22 = vld [vmem:[%s3163_s17 + $0x188] sm:$0xff] }
 0xbac   :  { %v1900_v24 = vpop.eup %1899  ;;  %v1240_v26 = vadd.f32 1e-05, %v1238_v23 }
 0xbad   :  { %v1242_v25 = vmul.f32 %v1900_v24, %v1239_v21  ;;  %vm1248_vm8 = vweird.f32 %v1900_v24  ;;  %v1780_v21 = vld [vmem:[%s3163_s17 + $0x108] sm:$0xff] }
 0xbae   :  { %1901 = vrsqrt.f32 %v1240_v26  ;;  %vm1249_vm10 = vmor %vm1247_vm9, %vm1248_vm8  ;;  %vm1257_vm12 = vweird.f32 %v1240_v26 }
 0xbaf   :  { %v1243_v27 = vmul.f32 %v1900_v24, %v1242_v25  ;;  %v1779_v25 = vld [vmem:[%s3163_s17 + $0x100] sm:$0xff] }
 0xbb1   :  { %v1244_v29 = vmul.f32 0.5, %v1243_v27 }
 0xbb3   :  { %v1245_v30 = vsub.f32 1.5, %v1244_v29 }
 0xbb4   :  { %v1902_v31 = vpop.eup %1901 }
 0xbb5   :  { %v1246_v28 = vmul.f32 %v1900_v24, %v1245_v30  ;;  %v1252_v33 = vmul.f32 %v1902_v31, %v1240_v26  ;;  %vm1258_vm11 = vweird.f32 %v1902_v31  ;;  %v1795_v26 = vld [vmem:[%s3163_s17 + $0x180] sm:$0xff] }
 0xbb6   :  { %vm1259_vm13 = vmor %vm1257_vm12, %vm1258_vm11 }
 0xbb7   :  { %v1250_v34 = vsel %vm1249_vm10, %v1900_v24, %v1246_v28  ;;  %v1253_v36 = vmul.f32 %v1902_v31, %v1252_v33 }
 0xbb8   :  { %v1261_v35 = vmul.f32 %v1250_v34, %v2930_v60  ;;  %v1806_v60 = vld [vmem:[%s3163_s17 + $0x1d8] sm:$0xff] }
 0xbb9   :  { %v1254_v39 = vmul.f32 0.5, %v1253_v36  ;;  %1498 = vmatpush.msrb.mxu1 %v1806_v60 }
 0xbba   :  { %v1266_v38 = vmul.f32 %v1848_v32, %v1261_v35 }
 0xbbb   :  { %v1255_v40 = vsub.f32 1.5, %v1254_v39  ;;  %1499 = vmatpush.msrb.mxu1 %v1805_v3 }
 0xbbc   :  { %v1271_v41 = vadd.f32 %v1849_v37, %v1266_v38 }
 0xbbd   :  { %v1256_v43 = vmul.f32 %v1902_v31, %v1255_v40  ;;  %1500 = vmatpush.msrb.mxu1 %v1804_v57 }
 0xbbe   :  { %1771 = vmatmul.msk.f32.vlgmr.msrb.gmra.mxu2 %vm232_vm0, %v1271_v41  ;;  %1773 = vmatmul.msk.f32.vlgmr.msrb.gmra.mxu3 %vm232_vm0, %v1271_v41 }
 0xbbf   :  { %v1260_v44 = vsel %vm1259_vm13, %v1902_v31, %v1256_v43  ;;  %1501 = vmatpush.msrb.mxu1 %v1803_v63 }
 0xbc0   :  { %v1262_v42 = vmul.f32 %v1260_v44, %v2937_v62  ;;  %v1787_v62 = vld [vmem:[%s3163_s17 + $0x140] sm:$0xff] }
 0xbc1   :  { %1478 = vmatpush.msrb.mxu0 %v1787_v62  ;;  %1502 = vmatpush.msrb.mxu1 %v1802_v4 }
 0xbc2   :  { %v1267_v45 = vmul.f32 %v1848_v32, %v1262_v42 }
 0xbc3   :  { %1479 = vmatpush.msrb.mxu0 %v1786_v7  ;;  %1503 = vmatpush.msrb.mxu1 %v1801_v2 }
 0xbc4   :  { %v1272_v47 = vadd.f32 %v1849_v37, %v1267_v45 }
 0xbc5   :  { %1480 = vmatpush.msrb.mxu0 %v1785_v5  ;;  %1504 = vmatpush.msrb.mxu1 %v1800_v9 }
 0xbc6   :  { %1772 = vmatmul.msk.f32.gmra.mxu2 %vm232_vm0, %v1272_v47  ;;  %1774 = vmatmul.msk.f32.gmra.mxu3 %vm232_vm0, %v1272_v47 }
 0xbc7   :  { %1481 = vmatpush.msrb.mxu0 %v1784_v8  ;;  %1505 = vmatpush.msrb.mxu1 %v1799_v13 }
 0xbc9   :  { %1482 = vmatpush.msrb.mxu0 %v1783_v0  ;;  %1506 = vmatpush.msrb.mxu1 %v1798_v1 }
 0xbcb   :  { %1483 = vmatpush.msrb.mxu0 %v1782_v14  ;;  %1507 = vmatpush.msrb.mxu1 %v1797_v20 }
 0xbcd   :  { %1484 = vmatpush.msrb.mxu0 %v1781_v18  ;;  %1508 = vmatpush.msrb.mxu1 %v1796_v22 }
 0xbcf   :  { %1485 = vmatpush.msrb.mxu0 %v1780_v21  ;;  %1509 = vmatpush.msrb.mxu1 %v1795_v26 }
 0xbd1   :  { %1486 = vmatpush.msrb.mxu0 %v1779_v25 }
 0xc41   :  { %v1320_v15 = vpop.f32.mrf.mxu2  ;;  %v1343_v16 = vpop.f32.mrf.mxu3 }
 0xc42   :  { %v3079_v17 = vadd.f32 %v1320_v15, %v1293_v11  ;;  %v3081_v19 = vadd.f32 %v1343_v16, %v1294_v12 }
 0xc44   :  { %v1775_v23 = vmul.f32 -1.702, %v3079_v17  ;;  %v1776_v24 = vmul.f32 -1.702, %v3081_v19 }
 0xc46   :  { %v1357_v27 = vmul.f32 1.442695, %v1775_v23  ;;  %v1359_v29 = vmul.f32 1.442695, %v1776_v24 }
 0xc48   :  { %1903 = vpow2.f32 %v1357_v27 }
 0xc49   :  { %1905 = vpow2.f32 %v1359_v29  ;;  %v1323_v30 = vpop.f32.mrf.mxu2  ;;  %v1346_v31 = vpop.f32.mrf.mxu3  ;;  %v1850_v29 = vld [vmem:[%s3164_s18 + $0x1] ss:$0 sm:$0xff] }
 0xc4a   :  { %v3103_v28 = vadd.f32 %v1323_v30, %v1293_v11  ;;  %v3105_v32 = vadd.f32 %v1346_v31, %v1294_v12 }
 0xc4c   :  { %v1777_v33 = vmul.f32 -1.702, %v3103_v28  ;;  %v1778_v34 = vmul.f32 -1.702, %v3105_v32 }
 0xc4e   :  { %v1904_v35 = vpop.eup %1903  ;;  %v1361_v38 = vmul.f32 1.442695, %v1777_v33  ;;  %v1363_v40 = vmul.f32 1.442695, %v1778_v34 }
 0xc4f   :  { %v1906_v36 = vpop.eup %1905  ;;  %v1365_v37 = vadd.f32 1.0, %v1904_v35 }
 0xc50   :  { %v1366_v39 = vadd.f32 1.0, %v1906_v36 }
 0xc51   :  { %1907 = vrcp.f32 %v1365_v37  ;;  %v1378_v50 = vand.u32 2147483647, %v1365_v37  ;;  %v1380_v52 = vand.u32 2147483648, %v1365_v37  ;;  %vm1374_vm1 = vweird.f32 %v1365_v37 }
 0xc52   :  { %1909 = vrcp.f32 %v1366_v39  ;;  %v1395_v58 = vand.u32 2147483648, %v1366_v39  ;;  %v1393_v60 = vand.u32 2147483647, %v1366_v39  ;;  %vm1389_vm3 = vweird.f32 %v1366_v39 }
 0xc53   :  { %1911 = vpow2.f32 %v1361_v38  ;;  %v1381_v3 = vor.u32 1.1754944e-38, %v1380_v52  ;;  %vm1379_vm4 = vcmp.eq.f32.partialorder %v1378_v50, 8.507059e+37 }
 0xc54   :  { %1913 = vpow2.f32 %v1363_v40  ;;  %v1396_v62 = vor.u32 1.1754944e-38, %v1395_v58  ;;  %vm1394_vm6 = vcmp.eq.f32.partialorder %v1393_v60, 8.507059e+37 }
 0xc57   :  { %v1908_v41 = vpop.eup %1907 }
 0xc58   :  { %v1910_v43 = vpop.eup %1909  ;;  %v1370_v44 = vmul.f32 %v1908_v41, %v1365_v37  ;;  %vm1375_vm14 = vweird.f32 %v1908_v41 }
 0xc59   :  { %v1912_v42 = vpop.eup %1911  ;;  %v1385_v45 = vmul.f32 %v1910_v43, %v1366_v39  ;;  %vm1390_vm15 = vweird.f32 %v1910_v43  ;;  %vm1376_vm2 = vmor %vm1374_vm1, %vm1375_vm14 }
 0xc5a   :  { %v1914_v47 = vpop.eup %1913  ;;  %v1371_v48 = vsub.f32 1.0, %v1370_v44  ;;  %v1367_v49 = vadd.f32 1.0, %v1912_v42  ;;  %vm1391_vm5 = vmor %vm1389_vm3, %vm1390_vm15  ;;  %v1577_v44 = vld [vmem:[#allocation7] sm:$0x3] }
 0xc5b   :  { %v1386_v54 = vsub.f32 1.0, %v1385_v45  ;;  %v1368_v55 = vadd.f32 1.0, %v1914_v47  ;;  %v1578_v42 = vperm.slane %v1577_v44, 0 }
 0xc5c   :  { %v1372_v53 = vmul.f32 %v1908_v41, %v1371_v48  ;;  %1915 = vrcp.f32 %v1367_v49  ;;  %v1410_v0 = vand.u32 2147483648, %v1367_v49  ;;  %v1408_v1 = vand.u32 2147483647, %v1367_v49 }
 0xc5d   :  { %v1387_v59 = vmul.f32 %v1910_v43, %v1386_v54  ;;  %1917 = vrcp.f32 %v1368_v55  ;;  %v1425_v15 = vand.u32 2147483648, %v1368_v55  ;;  %v1423_v18 = vand.u32 2147483647, %v1368_v55 }
 0xc5e   :  { %v1373_v46 = vadd.f32 %v1908_v41, %v1372_v53  ;;  %vm1404_vm9 = vweird.f32 %v1367_v49  ;;  %vm1419_vm11 = vweird.f32 %v1368_v55  ;;  %vm1409_vm12 = vcmp.eq.f32.partialorder %v1408_v1, 8.507059e+37  ;;  %v1608_v1 = vld [vmem:[#allocation17] sm:$0xff] }
 0xc5f   :  { %v1388_v61 = vadd.f32 %v1910_v43, %v1387_v59  ;;  %v1426_v22 = vor.u32 1.1754944e-38, %v1425_v15  ;;  %vm1424_vm14 = vcmp.eq.f32.partialorder %v1423_v18, 8.507059e+37  ;;  %v1585_v53 = vperm.slane %v1577_v44, 1 }
 0xc60   :  { %v1377_v57 = vsel %vm1376_vm2, %v1908_v41, %v1373_v46  ;;  %v1579_v41 = vlaneseq  ;;  %v1615_v46 = vld [vmem:[#allocation17 + $0x38] sm:$0xff] }
 0xc61   :  { %v1382_v63 = vsel %vm1379_vm4, %v1381_v3, %v1377_v57  ;;  %v1392_v7 = vsel %vm1391_vm5, %v1910_v43, %v1388_v61  ;;  %1630 = vmatpush.msra.mxu2 %v1615_v46 }
 0xc62   :  { %v1916_v4 = vpop.eup %1915  ;;  %v1429_v5 = vmul.f32 %v1382_v63, %v3079_v17  ;;  %v1397_v2 = vsel %vm1394_vm6, %v1396_v62, %v1392_v7  ;;  %v1411_v17 = vor.u32 1.1754944e-38, %v1410_v0  ;;  %v1580_v43 = vshrl.u32 %v1579_v41, 7  ;;  %v1614_v63 = vld [vmem:[#allocation17 + $0x30] sm:$0xff]  ;;  %v1609_v0 = vld [vmem:[#allocation17 + $0x8] sm:$0xff] }
 0xc63   :  { %v1918_v6 = vpop.eup %1917  ;;  %v1430_v8 = vmul.f32 %v1397_v2, %v3081_v19  ;;  %v1400_v9 = vmul.f32 %v1916_v4, %v1367_v49  ;;  %vm1405_vm7 = vweird.f32 %v1916_v4  ;;  %1631 = vmatpush.msra.mxu2 %v1614_v63  ;;  %vm1618_vm6 = vcmask 1041409  }
 0xc64   :  { %1487 = vmatmul.f32.vlgmr.msrb.gmra.mxu0 %v1429_v5  ;;  %v1415_v11 = vmul.f32 %v1918_v6, %v1368_v55  ;;  %vm1420_vm8 = vweird.f32 %v1918_v6  ;;  %vm1406_vm10 = vmor %vm1404_vm9, %vm1405_vm7  ;;  %1830 = vset.pattern.permute.xlu1 %v1580_v43  ;;  %v1613_v5 = vld [vmem:[#allocation17 + $0x28] sm:$0xff]  ;;  %vm1642_vm7 = vcmask 517120  }
 0xc65   :  { %1510 = vmatmul.f32.vlgmr.msrb.gmra.mxu1 %v1430_v8  ;;  %v1401_v12 = vsub.f32 1.0, %v1400_v9  ;;  %vm1421_vm13 = vmor %vm1419_vm11, %vm1420_vm8  ;;  %1831 = vset.pattern.permute.xlu2 %v1580_v43  ;;  %v1611_v9 = vld [vmem:[#allocation17 + $0x18] sm:$0xff] }
 0xc66   :  { %v1416_v13 = vsub.f32 1.0, %v1415_v11  ;;  %1832 = vset.pattern.permute.xlu0 %v1580_v43  ;;  %1632 = vmatpush.msra.mxu2 %v1613_v5 }
 0xc67   :  { %v1402_v14 = vmul.f32 %v1916_v4, %v1401_v12  ;;  %v1610_v12 = vld [vmem:[#allocation17 + $0x10] sm:$0xff] }
 0xc68   :  { %v1417_v16 = vmul.f32 %v1918_v6, %v1416_v13 }
 0xc69   :  { %v1403_v20 = vadd.f32 %v1916_v4, %v1402_v14 }
 0xc6a   :  { %v1418_v21 = vadd.f32 %v1918_v6, %v1417_v16  ;;  %v1852_v16 = vld [vmem:[%s3166_s20] ss:$0 sm:$0xff] }
 0xc6b   :  { %v1407_v19 = vsel %vm1406_vm10, %v1916_v4, %v1403_v20 }
 0xc6c   :  { %v1412_v23 = vsel %vm1409_vm12, %v1411_v17, %v1407_v19  ;;  %v1422_v24 = vsel %vm1421_vm13, %v1918_v6, %v1418_v21  ;;  %v1612_v6 = vld [vmem:[#allocation17 + $0x20] sm:$0xff] }
 0xc6d   :  { %v1431_v25 = vmul.f32 %v1412_v23, %v3103_v28  ;;  %v1427_v26 = vsel %vm1424_vm14, %v1426_v22, %v1422_v24  ;;  %1633 = vmatpush.msra.mxu2 %v1612_v6 }
 0xc6e   :  { %v1432_v27 = vmul.f32 %v1427_v26, %v3105_v32 }
 0xc6f   :  { %1490 = vmatmul.f32.gmra.mxu0 %v1431_v25  ;;  %1634 = vmatpush.msra.mxu2 %v1611_v9 }
 0xc70   :  { %1513 = vmatmul.f32.gmra.mxu1 %v1432_v27 }
 0xc71   :  { %1635 = vmatpush.msra.mxu2 %v1610_v12 }
 0xc73   :  { %1636 = vmatpush.msra.mxu2 %v1609_v0 }
 0xc75   :  { %1637 = vmatpush.msra.mxu2 %v1608_v1 }
 0xce1   :  { %v1488_v30 = vpop.f32.mrf.mxu0 }
 0xce2   :  { %v1489_v31 = vadd.f32 %v1850_v29, %v1488_v30  ;;  %v1511_v33 = vpop.f32.mrf.mxu1 }
 0xce4   :  { %v1512_v34 = vadd.f32 %v1511_v33, %v1489_v31 }
 0xce6   :  { %v1517_v35 = vadd.f32 %v1512_v34, %v2919_v51 }
 0xce8   :  { %v1521_v36 = vsel %vm232_vm0, %v1517_v35, 0.0 }
 0xce9   :  { %1522 = vadd.xlane.f32.xlu0 %v1521_v36 }
 0xcec   :  { %v1491_v37 = vpop.f32.mrf.mxu0 }
 0xced   :  { %v1492_v28 = vadd.f32 %v1850_v29, %v1491_v37  ;;  %v1514_v38 = vpop.f32.mrf.mxu1 }
 0xcef   :  { %v1515_v39 = vadd.f32 %v1514_v38, %v1492_v28 }
 0xcf1   :  { %v1518_v32 = vadd.f32 %v1515_v39, %v2924_v56 }
 0xcf3   :  { %v1524_v40 = vsel %vm232_vm0, %v1518_v32, 0.0 }
 0xcf4   :  { %1525 = vadd.xlane.f32.xlu1 %v1524_v40 }
 0xd0d   :  { %1583 = vperm.xlu1 %1830, %v1578_v42  }
 0xd5c   :  { %v1523_v51 = vpop.xlane.xlu0 %1522 }
 0xd5d   :  { %v1527_v45 = vmul.f32 %v1523_v51, %v2426_v10 }
 0xd5f   :  { %v1529_v47 = vsub.f32 %v1517_v35, %v1527_v45 }
 0xd61   :  { %v1531_v48 = vmul.f32 %v1529_v47, %v1529_v47 }
 0xd63   :  { %v1533_v49 = vsel %vm232_vm0, %v1531_v48, 0.0 }
 0xd64   :  { %1534 = vadd.xlane.f32.xlu2 %v1533_v49 }
 0xd67   :  { %v1526_v56 = vpop.xlane.xlu1 %1525 }
 0xd68   :  { %v1528_v50 = vmul.f32 %v1526_v56, %v2426_v10 }
 0xd6a   :  { %v1530_v52 = vsub.f32 %v1518_v32, %v1528_v50 }
 0xd6c   :  { %v1532_v54 = vmul.f32 %v1530_v52, %v1530_v52 }
 0xd6e   :  { %v1536_v55 = vsel %vm232_vm0, %v1532_v54, 0.0 }
 0xd6f   :  { %1537 = vadd.xlane.f32.xlu0 %v1536_v55 }
 0xd7c   :  { %1590 = vperm.xlu2 %1831, %v1585_v53  }
 0xd7f   :  { %v1584_v21 = vpop.permute.xlu1 %1583 }
 0xdd7   :  { %v1535_v58 = vpop.xlane.xlu2 %1534 }
 0xdd8   :  { %v1539_v59 = vmul.f32 %v1535_v58, %v2426_v10 }
 0xdda   :  { %v1541_v60 = vadd.f32 1e-05, %v1539_v59 }
 0xddc   :  { %1919 = vrsqrt.f32 %v1541_v60  ;;  %vm1549_vm1 = vweird.f32 %v1541_v60 }
 0xddf   :  { %v1591_v34 = vpop.permute.xlu2 %1590 }
 0xde2   :  { %v1920_v3 = vpop.eup %1919  ;;  %v1538_v61 = vpop.xlane.xlu0 %1537 }
 0xde3   :  { %v1544_v57 = vmul.f32 %v1920_v3, %v1541_v60  ;;  %v1540_v62 = vmul.f32 %v1538_v61, %v2426_v10  ;;  %vm1550_vm15 = vweird.f32 %v1920_v3  ;;  %v1851_v10 = vld [vmem:[%s3165_s19] ss:$0 sm:$0xff] }
 0xde4   :  { %vm1551_vm2 = vmor %vm1549_vm1, %vm1550_vm15 }
 0xde5   :  { %v1545_v7 = vmul.f32 %v1920_v3, %v1544_v57  ;;  %v1542_v4 = vadd.f32 1e-05, %v1540_v62 }
 0xde7   :  { %v1546_v2 = vmul.f32 0.5, %v1545_v7  ;;  %1921 = vrsqrt.f32 %v1542_v4  ;;  %vm1559_vm4 = vweird.f32 %v1542_v4 }
 0xde9   :  { %v1547_v8 = vsub.f32 1.5, %v1546_v2 }
 0xdeb   :  { %v1548_v11 = vmul.f32 %v1920_v3, %v1547_v8 }
 0xded   :  { %v1922_v13 = vpop.eup %1921  ;;  %v1552_v14 = vsel %vm1551_vm2, %v1920_v3, %v1548_v11 }
 0xdee   :  { %v1554_v15 = vmul.f32 %v1922_v13, %v1542_v4  ;;  %v1563_v18 = vmul.f32 %v1552_v14, %v1529_v47  ;;  %vm1560_vm3 = vweird.f32 %v1922_v13 }
 0xdef   :  { %vm1561_vm5 = vmor %vm1559_vm4, %vm1560_vm3 }
 0xdf0   :  { %v1555_v20 = vmul.f32 %v1922_v13, %v1554_v15  ;;  %v1568_v17 = vmul.f32 %v1851_v10, %v1563_v18 }
 0xdf2   :  { %v1556_v19 = vmul.f32 0.5, %v1555_v20  ;;  %v1573_v22 = vadd.f32 %v1852_v16, %v1568_v17 }
 0xdf4   :  { %v1557_v23 = vsub.f32 1.5, %v1556_v19  ;;  %v1592_v24 = vmul.f32 %v1584_v21, %v1573_v22  ;;  %1575 = vst.msk [vmem:[#allocation19] sm:$0xff] %vm232_vm0, %v1573_v22 }
 0xdf6   :  { %v1558_v25 = vmul.f32 %v1922_v13, %v1557_v23  ;;  %v1594_v26 = vsel %vm232_vm0, %v1592_v24, 0.0 }
 0xdf7   :  { %v1595_v27 = vrot.slane %v1594_v26, 4 }
 0xdf8   :  { %v1562_v29 = vsel %vm1561_vm5, %v1922_v13, %v1558_v25 }
 0xdf9   :  { %v1564_v30 = vmul.f32 %v1562_v29, %v1530_v52  ;;  %v1596_v33 = vadd.f32 %v1595_v27, %v1594_v26 }
 0xdfb   :  { %v1569_v31 = vmul.f32 %v1851_v10, %v1564_v30  ;;  %v1597_v37 = vrot.slane %v1596_v33, 2 }
 0xdfd   :  { %v1574_v35 = vadd.f32 %v1852_v16, %v1569_v31  ;;  %v1598_v39 = vadd.f32 %v1597_v37, %v1596_v33 }
 0xdff   :  { %v1593_v36 = vmul.f32 %v1591_v34, %v1574_v35  ;;  %1576 = vst.msk [vmem:[#allocation19 + $0x8] sm:$0xff] %vm232_vm0, %v1574_v35  ;;  %v1599_v41 = vrot.slane %v1598_v39, 1 }
 0xe00   :  { %1656 = dma.vmem_to_hbm [thread:$0]  %s1649_s3, 256, %s1651_s15, [#allocation4], %s2234_s5, %s2234_s5, %s2235_s25  }
 0xe01   :  { %v1601_v28 = vsel %vm232_vm0, %v1593_v36, 0.0  ;;  %v1600_v42 = vadd.f32 %v1599_v41, %v1598_v39 }
 0xe02   :  { %v1602_v38 = vrot.slane %v1601_v28, 4 }
 0xe04   :  { %v1603_v32 = vadd.f32 %v1602_v38, %v1601_v28 }
 0xe06   :  { %v1604_v40 = vrot.slane %v1603_v32, 2 }
 0xe08   :  { %v1605_v43 = vadd.f32 %v1604_v40, %v1603_v32 }
 0xe0a   :  { %v1606_v44 = vrot.slane %v1605_v43, 1 }
 0xe0c   :  { %v1607_v51 = vadd.f32 %v1606_v44, %v1605_v43 }
 0xe0e   :  { %v1619_v45 = vsel %vm1618_vm6, %v1607_v51, %v1600_v42 }
 0xe0f   :  { %1812 = vmatmul.msk.f32.vlgmr.msra.gmra.mxu2 %vm232_vm0, %v1619_v45 }
 0xe92   :  { %v1639_v47 = vpop.f32.mrf.mxu2 }
 0xe93   :  { %1643 = vst.msk [vmem:[#allocation20] sm:$0x3] %vm1642_vm7, %v1639_v47 }
 0xe94   :  { %1667 = dma.vmem_to_hbm [thread:$0]  %s1663_s24, 32, %s1665_s21, [#allocation21]  }
 0xe95   :  { %2223 = dma.done.wait [#allocation4], 256  }
 0xe96   :  { %2224 = vsyncadd [#allocation4], 4294967040 }
 0xe97   :  { %2225 = dma.done.wait [#allocation21], 32  }
 0xe98   :  { %2226 = vsyncadd [#allocation21], 4294967264 }
 0xe99   :  { %1676 = vsyncpa [#allocation3], 1 }
 0xe9a   :  { %1677 = vsyncpa [#allocation6], 1 }
 0xe9b   :  { %1678 = vsyncpa [#allocation9], 1 }
 0xe9c   :  { %1679 = vsyncpa [#allocation12], 1 }
 0xe9d   :  { %1680 = vsyncpa [#allocation15], 1 }
 0xe9e   :  { %1681 = vsyncpa [#allocation18], 1 }
 0xe9f   :  { %1682 = vsyncpa [#allocation4], 1 }
 0xea0   :  { %1683 = vsyncpa [#allocation21], 1 }

</bundles_post_ra>
